<compile_context>
chip_gen: v7x
topology: tpu7x:2x2x1
jax: 0.10.0
libtpu: 0.0.40
codegen_flags: <defaults>
</compile_context>

<pallas_src>
import functools

import jax
import jax.numpy as jnp
from jax.experimental import pallas as pl
from jax.experimental.pallas import tpu as pltpu

BACKBONE_DIM = 512      # OSNet feature dim (self.fc = nn.Linear(512, embedding_dim))
EMBED_DIM = 256         # embedding_dim
WEIGHT1 = 0.5
WEIGHT2 = 0.5
EPS = 1e-12             # torch.nn.functional.normalize default eps


def _round_up(x, m):
    return ((x + m - 1) // m) * m


def _l2_normalize(v):
    # matches F.normalize(v, p=2, dim=1): v / max(||v||_2, eps)
    ss = jnp.sum(v * v, axis=1, keepdims=True)
    inv = pl.reciprocal(jnp.maximum(jnp.sqrt(ss), EPS), approx=False)
    return v * inv


def ensemble_kernel(x_ref, wbb_ref, bbb_ref, wfc_ref, bfc_ref, o_ref, acc_ref,
                    *, hw_total, hw_tile, mask_hw):
    # x_ref  : (TILE_N, C, HW_TILE) f32 block of the input stream
    # wbb_ref: (C, 2*BACKBONE_DIM)   fused surrogate-backbone head weights
    # bbb_ref: (1, 2*BACKBONE_DIM)
    # wfc_ref: (2*BACKBONE_DIM, 2*EMBED_DIM) block-diagonal fused fc weights
    # bfc_ref: (1, 2*EMBED_DIM)
    # o_ref  : (TILE_N, EMBED_DIM)
    # acc_ref: (TILE_N, C) pooled-sum accumulator (VMEM scratch, resident)
    hw_idx = pl.program_id(1)

    @pl.when(hw_idx == 0)
    def _init():
        acc_ref[...] = jnp.zeros_like(acc_ref)

    xb = x_ref[...]
    if mask_hw:
        # Zero-copy remainder handling: lanes past the true H*W extent hold
        # undefined data; mask them out before accumulating.  The compare +
        # select is VPU filler under a memory-bound stream (free).
        lane = jax.lax.broadcasted_iota(jnp.int32, xb.shape, dimension=2)
        valid = (hw_idx * hw_tile + lane) < hw_total
        xb = jnp.where(valid, xb, 0.0)

    # global-average-pool: accumulate the per-channel sum; the 1/(H*W) scale
    # is applied once in the finalize step.
    acc_ref[...] += jnp.sum(xb, axis=-1)

    @pl.when(hw_idx == pl.num_programs(1) - 1)
    def _finalize():
        pooled = acc_ref[...] * jnp.float32(1.0 / hw_total)            # (TILE_N, C)

        # fused surrogate-backbone heads of both branches: C -> 1024
        feat = jnp.dot(pooled, wbb_ref[...],
                       preferred_element_type=jnp.float32) + bbb_ref[...]
        # fused (block-diagonal) OSNetReID.fc of both branches: 1024 -> 512
        emb = jnp.dot(feat, wfc_ref[...],
                      preferred_element_type=jnp.float32) + bfc_ref[...]

        emb1 = _l2_normalize(emb[:, :EMBED_DIM])    # branch 1, F.normalize(dim=1)
        emb2 = _l2_normalize(emb[:, EMBED_DIM:])    # branch 2, F.normalize(dim=1)

        combined = WEIGHT1 * emb1 + WEIGHT2 * emb2  # weighted ensemble
        o_ref[...] = _l2_normalize(combined)        # final L2 normalize


def _pack_params(params):
    """Fuse the two branches' weights for single MXU passes."""
    (wbb1, bbb1, wfc1, bfc1, wbb2, bbb2, wfc2, bfc2) = params
    wbb_cat = jnp.concatenate([wbb1, wbb2], axis=1)                 # (C, 1024)
    bbb_cat = jnp.concatenate([bbb1, bbb2], axis=1)                 # (1, 1024)
    wfc_blk = jnp.zeros((2 * BACKBONE_DIM, 2 * EMBED_DIM), jnp.float32)
    wfc_blk = wfc_blk.at[:BACKBONE_DIM, :EMBED_DIM].set(wfc1)
    wfc_blk = wfc_blk.at[BACKBONE_DIM:, EMBED_DIM:].set(wfc2)       # (1024, 512)
    bfc_cat = jnp.concatenate([bfc1, bfc2], axis=1)                 # (1, 512)
    return wbb_cat, bbb_cat, wfc_blk, bfc_cat


def ensemble_osnet_reid(x_nchw, params, *, tile_n=8, hw_tile=None):
    """x_nchw: (N, C, H, W) float32 -> (N, EMBED_DIM) float32, L2-normalized rows."""
    n, c, h, w = x_nchw.shape
    hw = h * w
    x = x_nchw.reshape(n, c, hw).astype(jnp.float32)   # free reshape (contiguous NCHW)

    tile_n = max(8, _round_up(tile_n, 8))               # sublane-aligned batch tile

    # Lane-dense H*W tile, capped by a VMEM budget for the double-buffered x block.
    if hw_tile is None:
        hw_tile = 4096
    hw_tile = _round_up(hw_tile, 128)
    budget_bytes = 8 * 1024 * 1024
    max_lanes = max(128, (budget_bytes // (2 * 4 * tile_n * c)) // 128 * 128)
    hw_tile = min(hw_tile, max_lanes, _round_up(hw, 128))

    grid = (pl.cdiv(n, tile_n), pl.cdiv(hw, hw_tile))
    mask_hw = (hw % hw_tile) != 0

    wbb_cat, bbb_cat, wfc_blk, bfc_cat = _pack_params(params)

    kernel = functools.partial(
        ensemble_kernel, hw_total=hw, hw_tile=hw_tile, mask_hw=mask_hw)

    const2d = lambda shape: pl.BlockSpec(shape, lambda i, j: (0, 0))

    out = pl.pallas_call(
        kernel,
        out_shape=jax.ShapeDtypeStruct((n, EMBED_DIM), jnp.float32),
        grid_spec=pltpu.PrefetchScalarGridSpec(
            num_scalar_prefetch=0,
            grid=grid,
            in_specs=[
                pl.BlockSpec((tile_n, c, hw_tile), lambda i, j: (i, 0, j)),
                const2d(wbb_cat.shape),
                const2d(bbb_cat.shape),
                const2d(wfc_blk.shape),
                const2d(bfc_cat.shape),
            ],
            out_specs=pl.BlockSpec((tile_n, EMBED_DIM), lambda i, j: (i, 0)),
            scratch_shapes=[pltpu.VMEM((tile_n, c), jnp.float32)],
        ),
        compiler_params=pltpu.CompilerParams(
            dimension_semantics=("parallel", "arbitrary")),
    )(x, wbb_cat, bbb_cat, wfc_blk, bfc_cat)
    return out


def init_params(key, c_in):
    ks = jax.random.split(key, 8)
    scale_bb = 1.0 / jnp.sqrt(jnp.float32(c_in))
    scale_fc = 1.0 / jnp.sqrt(jnp.float32(BACKBONE_DIM))
    wbb1 = jax.random.normal(ks[0], (c_in, BACKBONE_DIM), jnp.float32) * scale_bb
    bbb1 = jax.random.normal(ks[1], (1, BACKBONE_DIM), jnp.float32) * 0.01
    wfc1 = jax.random.normal(ks[2], (BACKBONE_DIM, EMBED_DIM), jnp.float32) * scale_fc
    bfc1 = jax.random.normal(ks[3], (1, EMBED_DIM), jnp.float32) * 0.01
    wbb2 = jax.random.normal(ks[4], (c_in, BACKBONE_DIM), jnp.float32) * scale_bb
    bbb2 = jax.random.normal(ks[5], (1, BACKBONE_DIM), jnp.float32) * 0.01
    wfc2 = jax.random.normal(ks[6], (BACKBONE_DIM, EMBED_DIM), jnp.float32) * scale_fc
    bfc2 = jax.random.normal(ks[7], (1, EMBED_DIM), jnp.float32) * 0.01
    return (wbb1, bbb1, wfc1, bfc1, wbb2, bbb2, wfc2, bfc2)


def reference(x_nchw, params):
    n, c, h, w = x_nchw.shape
    pooled = jnp.mean(x_nchw.reshape(n, c, h * w), axis=-1)
    (wbb1, bbb1, wfc1, bfc1, wbb2, bbb2, wfc2, bfc2) = params

    def branch(wbb, bbb, wfc, bfc):
        feat = pooled @ wbb + bbb
        emb = feat @ wfc + bfc
        nrm = jnp.sqrt(jnp.sum(emb * emb, axis=1, keepdims=True))
        return emb / jnp.maximum(nrm, EPS)

    e1 = branch(wbb1, bbb1, wfc1, bfc1)
    e2 = branch(wbb2, bbb2, wfc2, bfc2)
    comb = WEIGHT1 * e1 + WEIGHT2 * e2
    nrm = jnp.sqrt(jnp.sum(comb * comb, axis=1, keepdims=True))
    return comb / jnp.maximum(nrm, EPS)


if __name__ == "__main__":
    key = jax.random.PRNGKey(0)
    kx, kp, kx2 = jax.random.split(key, 3)

    # Case 1: aligned shapes; hw_tile=128 forces two reduction steps over
    # H*W=256, exercising the pipelined pooled-sum accumulator.
    N, C, H, W = 2, 4, 16, 16
    x = jax.random.normal(kx, (N, C, H, W), jnp.float32)
    params = init_params(kp, C)

    out = jax.block_until_ready(ensemble_osnet_reid(x, params, hw_tile=128))
    ref = reference(x, params)
    assert out.shape == (N, EMBED_DIM)
    assert jnp.allclose(out, ref, atol=1e-5, rtol=1e-5), "case 1: mismatch vs reference"
    assert jnp.allclose(jnp.linalg.norm(out, axis=1), 1.0, atol=1e-5)

    # Case 2: ragged shapes (batch not a multiple of 8, H*W=100 not a multiple
    # of 128) exercising the zero-copy masked-remainder / dropped-OOB path.
    N2, H2, W2 = 3, 10, 10
    x2 = jax.random.normal(kx2, (N2, C, H2, W2), jnp.float32)
    out2 = jax.block_until_ready(ensemble_osnet_reid(x2, params))
    ref2 = reference(x2, params)
    assert out2.shape == (N2, EMBED_DIM)
    assert jnp.allclose(out2, ref2, atol=1e-5, rtol=1e-5), "case 2: mismatch vs reference"
    assert jnp.allclose(jnp.linalg.norm(out2, axis=1), 1.0, atol=1e-5)

    print("KERNEL_OK")
</pallas_src>

<mosaic_0001>
module attributes {stable_mosaic.version = 11 : i64} {
  func.func @ensemble_kernel(%arg0: i32, %arg1: i32, %arg2: memref<8x4x128xf32, #tpu.memory_space<vmem>>, %arg3: memref<4x1024xf32, #tpu.memory_space<vmem>>, %arg4: memref<1x1024xf32, #tpu.memory_space<vmem>>, %arg5: memref<1024x512xf32, #tpu.memory_space<vmem>>, %arg6: memref<1x512xf32, #tpu.memory_space<vmem>>, %arg7: memref<8x256xf32, #tpu.memory_space<vmem>>, %arg8: memref<8x4xf32, #tpu.memory_space<vmem>>) attributes {dimension_semantics = [#tpu.dimension_semantics<parallel>, #tpu.dimension_semantics<arbitrary>], iteration_bounds = array<i64: 1, 2>, scalar_prefetch = 0 : i64, scratch_operands = 1 : i64, tpu.core_type = #tpu.core_type<tc>, window_params = [{transform_indices = @transform_0, window_bounds = array<i64: 8, 4, 128>}, {pipeline_mode = #tpu.pipeline_mode<synchronous>, transform_indices = @transform_1, window_bounds = array<i64: 4, 1024>}, {pipeline_mode = #tpu.pipeline_mode<synchronous>, transform_indices = @transform_2, window_bounds = array<i64: 1, 1024>}, {pipeline_mode = #tpu.pipeline_mode<synchronous>, transform_indices = @transform_3, window_bounds = array<i64: 1024, 512>}, {pipeline_mode = #tpu.pipeline_mode<synchronous>, transform_indices = @transform_4, window_bounds = array<i64: 1, 512>}, {transform_indices = @transform_5, window_bounds = array<i64: 8, 256>}]} {
    %c0_i32 = arith.constant 0 : i32
    %0 = arith.cmpi eq, %arg1, %c0_i32 : i32
    %1 = arith.extui %0 : i1 to i32
    %c0_i32_0 = arith.constant 0 : i32
    %2 = arith.cmpi ne, %1, %c0_i32_0 : i32
    scf.if %2 {
      %cst_8 = arith.constant 0.000000e+00 : f32
      %11 = vector.broadcast %cst_8 : f32 to vector<8x4xf32>
      %c0_9 = arith.constant 0 : index
      %c0_10 = arith.constant 0 : index
      %12 = vector.load %arg8[%c0_9, %c0_10] : memref<8x4xf32, #tpu.memory_space<vmem>>, vector<8x4xf32>
      tpu.vector_store %arg8[%c0_9, %c0_10], %11 {strides = array<i32>} : memref<8x4xf32, #tpu.memory_space<vmem>>, vector<8x4xf32>,
    } else {
    }
    %c0 = arith.constant 0 : index
    %c0_1 = arith.constant 0 : index
    %c0_2 = arith.constant 0 : index
    %3 = vector.load %arg2[%c0, %c0_1, %c0_2] : memref<8x4x128xf32, #tpu.memory_space<vmem>>, vector<8x4x128xf32>
    %c0_3 = arith.constant 0 : index
    %c0_4 = arith.constant 0 : index
    %4 = vector.load %arg8[%c0_3, %c0_4] : memref<8x4xf32, #tpu.memory_space<vmem>>, vector<8x4xf32>
    %cst = arith.constant dense<0.000000e+00> : vector<8x4xf32>
    %5 = vector.multi_reduction <add>, %3, %cst [2] : vector<8x4x128xf32> to vector<8x4xf32>
    %6 = arith.addf %4, %5 : vector<8x4xf32>
    %c0_5 = arith.constant 0 : index
    %c0_6 = arith.constant 0 : index
    %7 = vector.load %arg8[%c0_5, %c0_6] : memref<8x4xf32, #tpu.memory_space<vmem>>, vector<8x4xf32>
    tpu.vector_store %arg8[%c0_5, %c0_6], %6 {strides = array<i32>} : memref<8x4xf32, #tpu.memory_space<vmem>>, vector<8x4xf32>,
    %c1_i32 = arith.constant 1 : i32
    %8 = arith.cmpi eq, %arg1, %c1_i32 : i32
    %9 = arith.extui %8 : i1 to i32
    %c0_i32_7 = arith.constant 0 : i32
    %10 = arith.cmpi ne, %9, %c0_i32_7 : i32
    scf.if %10 {
      %c0_8 = arith.constant 0 : index
      %c0_9 = arith.constant 0 : index
      %11 = vector.load %arg8[%c0_8, %c0_9] : memref<8x4xf32, #tpu.memory_space<vmem>>, vector<8x4xf32>
      %cst_10 = arith.constant 3.906250e-03 : f32
      %12 = vector.broadcast %cst_10 : f32 to vector<8x4xf32>
      %13 = arith.mulf %11, %12 : vector<8x4xf32>
      %c0_11 = arith.constant 0 : index
      %c0_12 = arith.constant 0 : index
      %14 = vector.load %arg3[%c0_11, %c0_12] : memref<4x1024xf32, #tpu.memory_space<vmem>>, vector<4x1024xf32>
      %cst_13 = arith.constant dense<0.000000e+00> : vector<8x1024xf32>
      %15 = tpu.matmul %13, %14, %cst_13 {dimension_numbers = #tpu.dot_dimension_numbers<[1], [0], [0], [1], [0, 0, 1, 1], [], []>} : vector<8x4xf32>, vector<4x1024xf32>, vector<8x1024xf32> -> vector<8x1024xf32>
      %c0_14 = arith.constant 0 : index
      %c0_15 = arith.constant 0 : index
      %16 = vector.load %arg4[%c0_14, %c0_15] : memref<1x1024xf32, #tpu.memory_space<vmem>>, vector<1x1024xf32>
      %17 = vector.broadcast %16 : vector<1x1024xf32> to vector<8x1024xf32>
      %18 = arith.addf %15, %17 : vector<8x1024xf32>
      %c0_16 = arith.constant 0 : index
      %c0_17 = arith.constant 0 : index
      %19 = vector.load %arg5[%c0_16, %c0_17] : memref<1024x512xf32, #tpu.memory_space<vmem>>, vector<1024x512xf32>
      %cst_18 = arith.constant dense<0.000000e+00> : vector<8x512xf32>
      %20 = tpu.matmul %18, %19, %cst_18 {dimension_numbers = #tpu.dot_dimension_numbers<[1], [0], [0], [1], [0, 0, 1, 1], [], []>} : vector<8x1024xf32>, vector<1024x512xf32>, vector<8x512xf32> -> vector<8x512xf32>
      %c0_19 = arith.constant 0 : index
      %c0_20 = arith.constant 0 : index
      %21 = vector.load %arg6[%c0_19, %c0_20] : memref<1x512xf32, #tpu.memory_space<vmem>>, vector<1x512xf32>
      %22 = vector.broadcast %21 : vector<1x512xf32> to vector<8x512xf32>
      %23 = arith.addf %20, %22 : vector<8x512xf32>
      %24 = vector.extract_strided_slice %23 {offsets = [0, 0], sizes = [8, 256], strides = [1, 1]} : vector<8x512xf32> to vector<8x256xf32>
      %25 = arith.mulf %24, %24 : vector<8x256xf32>
      %cst_21 = arith.constant dense<0.000000e+00> : vector<8xf32>
      %26 = vector.multi_reduction <add>, %25, %cst_21 [1] : vector<8x256xf32> to vector<8xf32>
      %27 = vector.shape_cast %26 : vector<8xf32> to vector<8x1xf32>
      %28 = math.sqrt %27 : vector<8x1xf32>
      %cst_22 = arith.constant 9.99999996E-13 : f32
      %29 = vector.broadcast %cst_22 : f32 to vector<8x1xf32>
      %30 = arith.maximumf %28, %29 : vector<8x1xf32>
      %31 = tpu.reciprocal %30 : vector<8x1xf32> -> vector<8x1xf32>
      %32 = vector.broadcast %31 : vector<8x1xf32> to vector<8x256xf32>
      %33 = arith.mulf %24, %32 : vector<8x256xf32>
      %34 = vector.extract_strided_slice %23 {offsets = [0, 256], sizes = [8, 256], strides = [1, 1]} : vector<8x512xf32> to vector<8x256xf32>
      %35 = arith.mulf %34, %34 : vector<8x256xf32>
      %cst_23 = arith.constant dense<0.000000e+00> : vector<8xf32>
      %36 = vector.multi_reduction <add>, %35, %cst_23 [1] : vector<8x256xf32> to vector<8xf32>
      %37 = vector.shape_cast %36 : vector<8xf32> to vector<8x1xf32>
      %38 = math.sqrt %37 : vector<8x1xf32>
      %cst_24 = arith.constant 9.99999996E-13 : f32
      %39 = vector.broadcast %cst_24 : f32 to vector<8x1xf32>
      %40 = arith.maximumf %38, %39 : vector<8x1xf32>
      %41 = tpu.reciprocal %40 : vector<8x1xf32> -> vector<8x1xf32>
      %42 = vector.broadcast %41 : vector<8x1xf32> to vector<8x256xf32>
      %43 = arith.mulf %34, %42 : vector<8x256xf32>
      %cst_25 = arith.constant 5.000000e-01 : f32
      %44 = vector.broadcast %cst_25 : f32 to vector<8x256xf32>
      %45 = arith.mulf %44, %33 : vector<8x256xf32>
      %cst_26 = arith.constant 5.000000e-01 : f32
      %46 = vector.broadcast %cst_26 : f32 to vector<8x256xf32>
      %47 = arith.mulf %46, %43 : vector<8x256xf32>
      %48 = arith.addf %45, %47 : vector<8x256xf32>
      %49 = arith.mulf %48, %48 : vector<8x256xf32>
      %cst_27 = arith.constant dense<0.000000e+00> : vector<8xf32>
      %50 = vector.multi_reduction <add>, %49, %cst_27 [1] : vector<8x256xf32> to vector<8xf32>
      %51 = vector.shape_cast %50 : vector<8xf32> to vector<8x1xf32>
      %52 = math.sqrt %51 : vector<8x1xf32>
      %cst_28 = arith.constant 9.99999996E-13 : f32
      %53 = vector.broadcast %cst_28 : f32 to vector<8x1xf32>
      %54 = arith.maximumf %52, %53 : vector<8x1xf32>
      %55 = tpu.reciprocal %54 : vector<8x1xf32> -> vector<8x1xf32>
      %56 = vector.broadcast %55 : vector<8x1xf32> to vector<8x256xf32>
      %57 = arith.mulf %48, %56 : vector<8x256xf32>
      %c0_29 = arith.constant 0 : index
      %c0_30 = arith.constant 0 : index
      %58 = vector.load %arg7[%c0_29, %c0_30] : memref<8x256xf32, #tpu.memory_space<vmem>>, vector<8x256xf32>
      tpu.vector_store %arg7[%c0_29, %c0_30], %57 {strides = array<i32>} : memref<8x256xf32, #tpu.memory_space<vmem>>, vector<8x256xf32>,
    } else {
    }
    return
  }
  func.func @transform_0(%arg0: i32, %arg1: i32) -> (i32, i32, i32) {
    %c0_i32 = arith.constant 0 : i32
    %c0_i32_0 = arith.constant 0 : i32
    return %arg0, %c0_i32, %arg1 : i32, i32, i32
  }
  func.func @transform_1(%arg0: i32, %arg1: i32) -> (i32, i32) {
    %c0_i32 = arith.constant 0 : i32
    %c0_i32_0 = arith.constant 0 : i32
    %c0_i32_1 = arith.constant 0 : i32
    return %c0_i32, %c0_i32_0 : i32, i32
  }
  func.func @transform_2(%arg0: i32, %arg1: i32) -> (i32, i32) {
    %c0_i32 = arith.constant 0 : i32
    %c0_i32_0 = arith.constant 0 : i32
    %c0_i32_1 = arith.constant 0 : i32
    return %c0_i32, %c0_i32_0 : i32, i32
  }
  func.func @transform_3(%arg0: i32, %arg1: i32) -> (i32, i32) {
    %c0_i32 = arith.constant 0 : i32
    %c0_i32_0 = arith.constant 0 : i32
    %c0_i32_1 = arith.constant 0 : i32
    return %c0_i32, %c0_i32_0 : i32, i32
  }
  func.func @transform_4(%arg0: i32, %arg1: i32) -> (i32, i32) {
    %c0_i32 = arith.constant 0 : i32
    %c0_i32_0 = arith.constant 0 : i32
    %c0_i32_1 = arith.constant 0 : i32
    return %c0_i32, %c0_i32_0 : i32, i32
  }
  func.func @transform_5(%arg0: i32, %arg1: i32) -> (i32, i32) {
    %c0_i32 = arith.constant 0 : i32
    %c0_i32_0 = arith.constant 0 : i32
    return %arg0, %c0_i32 : i32, i32
  }
}

</mosaic_0001>

<bundles_post_ra>
// kernel: tpu_custom_call.1
= control target key start
LH: loop header
LB: loop body
LE: loop exit
PB: predicated region body
PF: predicated region fallthrough
CT: control target
= control target key end

     0   :  { %s3353_s0 = inlined_call_operand.hbm [shape: f32[2,4,256], index: 0, kind: input, shape index: {}]   ;;  %s3354_s1 = inlined_call_operand.hbm [shape: f32[4,1024], index: 1, kind: input, shape index: {}]   ;;  %s3355_s2 = inlined_call_operand.hbm [shape: f32[1,1024], index: 2, kind: input, shape index: {}]   ;;  %s3356_s3 = inlined_call_operand.hbm [shape: f32[1024,512], index: 3, kind: input, shape index: {}]   ;;  %s3357_s4 = inlined_call_operand.hbm [shape: f32[1,512], index: 4, kind: input, shape index: {}]   ;;  %s3358_s5 = inlined_call_operand.hbm [shape: f32[2,256], index: 5, kind: output, shape index: {}]  }
   0x1   :  { %3364 = sst [smem:[#allocation19_spill]] %s3354_s1 }
   0x2   :  { %3365 = sst [smem:[#allocation20_spill]] %s3358_s5 }
   0x3   :  { %10 = vsyncpa [#allocation4], 0 }
   0x4   :  { %12 = vsyncpa [#allocation4 + $0x1], 0 }
   0x5   :  { %13 = vsyncpa [#allocation7], 0 }
   0x6   :  { %14 = vsyncpa [#allocation10], 0 }
   0x7   :  { %15 = vsyncpa [#allocation5], 0  ;;  %s3033_s18 = smov 0   ;;  %s3035_s19 = smov 0  }
   0x8   :  { %s3037_s20 = smov 0   ;;  %s3039_s21 = smov 0  }
   0x9   :  { %s3041_s22 = smov 0   ;;  %s3043_s23 = smov 0  }
   0xa LB: > { %s3062_s24 = sadd.s32 4294967295, %s2985_s23   ;;  %s30_s25 = sadd.s32 1, %s2981_s22  ;;  %s2985_s23 = sphi %s3043_s23, %s21_s23   ;;  %s2981_s22 = sphi %s3041_s22, %s3388_s22   ;;  %s2977_s21 = sphi %s3039_s21, %s3387_s21   ;;  %s2973_s20 = sphi %s3037_s20, %s3386_s20   ;;  %s2969_s19 = sphi %s3035_s19, %s3385_s19   ;;  %s2965_s18 = sphi %s3033_s18, %s3384_s18  }
   0xb   : > { %p31_p0 = scmp.ge.s32.totalorder %s30_s25, 2  ;;  %s42_s26 = sadd.s32 1, %s2973_s20 }
   0xc   : > { %p49_p1 = scmp.ne.s32.totalorder %s2973_s20, %s2969_s19  ;;  %p50_p2 = scmp.eq.s32.totalorder %s2985_s23, 0 }
   0xd   : > { %s3390_s25 = smov (%p31_p0, %s30_s25), 0  ;;  %p55_p4 = scmp.ne.s32.totalorder %s2969_s19, %s2965_s18 }
   0xe   : > { %3366 = sst [smem:[#allocation17_spill]] %s3390_s25  ;;  %p3071_p3 = por %p50_p2, %p49_p1 }
   0xf   : > { %s38_s28 = ssub.s32 %s2981_s22, %s3390_s25  ;;  %p3359_p5 = scmp.eq.s32.totalorder %s3062_s24, 0 }
  0x10   : > { %s3367_s27 = scalar_select %p3071_p3, 1, 0 }
  0x11   : > { %p40_p6 = scmp.eq.s32.totalorder %s38_s28, 0  ;;  %p2082_p7 = scmp.ge.s32.totalorder %s2985_s23, 1 }
  0x12   : > { %p3082_p8 = por %p3359_p5, %p55_p4  ;;  %p176_p9 = scmp.lt.s32.totalorder %s2985_s23, 3 }
  0x13   : > { %s3088_s30 = scalar_select %p40_p6, %s2973_s20, %s42_s26  }
  0x14   : > { %s3368_s29 = scalar_select %p3082_p8, 1, 0 }
  0x15   : > { %3369 = sst [smem:[#allocation18_spill]] %s3088_s30  ;;  %p3090_p10 = pnand %p2082_p7, %p176_p9 }
  0x16   : > { %s2987_s7 = smov [#allocation6]   ;;  %s2988_s9 = smov [#allocation9]  }
  0x17   : > { %s3370_s6 = scalar_select %p3090_p10, 1, 0 }
  0x18   : > { %p2663_p11 = pneg %p3090_p10  ;;  %s189_s8 = sshll.u32 %s2987_s7, 4  ;;  %s190_s8 = int_to_ptr.vmem [resolvable:$true] %s189_s8 }
  0x19   : > { %s210_s10 = sshll.u32 %s2988_s9, 4  ;;  %s3372_s1 = sld [smem:[#allocation19_spill]]  ;;  %s3102_s10 = int_to_ptr.vmem [resolvable:$true] %s210_s10 }
  0x1a   : > { %p3098_p12 = pnand %p2663_p11, %p3359_p5 }
  0x1c   : > { %p3112_p0 = pneg %p3098_p12 }
  0x1f   : > { %s2765_s14 = scalar_lea.hbm %s3372_s1, 512 }
  0x20   : > { %p2766_p13 = scmp.ne.s32.totalorder %s3372_s1, %s2765_s14  ;;  %p2772_p4 = scmp.lt.u32.totalorder %s2765_s14, %s3372_s1 }
  0x22   : > { %p2768_p1 = pnand %p3112_p0, %p2766_p13 }
  0x24   : > { %p2769_p2 = pneg %p2768_p1 }
  0x26   : > { %p2774_p6 = pnand %p2772_p4, %p2769_p2 }
  0x28   : > { %2777 = shalt.err (!%p2774_p6)
}
  0x29   : > { %s2778_s28 = scalar_lea.vmem %s190_s8, 512  ;;  %p2786_p5 = scmp.lt.s32.totalorder %s190_s8, %s190_s8 }
  0x2a   : > { %p2779_p7 = scmp.ne.s32.totalorder %s190_s8, %s2778_s28  ;;  %p2787_p8 = scmp.lt.s32.totalorder %s2778_s28, %s2778_s28 }
  0x2c   : > { %p2781_p9 = pnand %p2779_p7, %p3112_p0  ;;  %p2788_p10 = por %p2787_p8, %p2786_p5 }
  0x2e   : > { %p2782_p11 = pneg %p2781_p9 }
  0x30   : > { %p2789_p3 = pnand %p2788_p10, %p2782_p11 }
  0x32   : > { %2792 = shalt.err (!%p2789_p3)
}
  0x33   : > { %2666 = dma.hbm_to_vmem [thread:$0]  (!%p3098_p12), %s3372_s1, 512, %s190_s8, [#allocation7]  }
  0x34   : > { %s2793_s14 = scalar_lea.hbm %s3356_s3, 65536 }
  0x35   : > { %p2794_p13 = scmp.ne.s32.totalorder %s3356_s3, %s2793_s14  ;;  %p2800_p3 = scmp.lt.u32.totalorder %s2793_s14, %s3356_s3 }
  0x37   : > { %p2796_p1 = pnand %p2794_p13, %p3112_p0 }
  0x39   : > { %p2797_p5 = pneg %p2796_p1 }
  0x3b   : > { %p2802_p8 = pnand %p2800_p3, %p2797_p5 }
  0x3d   : > { %2805 = shalt.err (!%p2802_p8)
}
  0x3e   : > { %s2806_s8 = scalar_lea.vmem %s3102_s10, 65536  ;;  %p2814_p6 = scmp.lt.s32.totalorder %s3102_s10, %s3102_s10 }
  0x3f   : > { %p2807_p10 = scmp.ne.s32.totalorder %s3102_s10, %s2806_s8  ;;  %p2815_p7 = scmp.lt.s32.totalorder %s2806_s8, %s2806_s8 }
  0x41   : > { %p2809_p2 = pnand %p2807_p10, %p3112_p0  ;;  %p2816_p9 = por %p2815_p7, %p2814_p6 }
  0x43   : > { %p2810_p4 = pneg %p2809_p2 }
  0x45   : > { %p2817_p11 = pnand %p2816_p9, %p2810_p4 }
  0x47   : > { %2820 = shalt.err (!%p2817_p11)
}
  0x48   : > { %s2989_s28 = smov 512   ;;  %s2990_s7 = smov 32  }
  0x49   : > { %2672 = dma.hbm_to_vmem [thread:$0]  (!%p3098_p12), %s3356_s3, 65536, %s3102_s10, [#allocation10], %s2989_s28, %s2989_s28, %s2990_s7  }
  0x4a   : > { %s2991_s13 = smov [#allocation8]   ;;  %s2992_s15 = smov [#allocation11]  }
  0x4b   : > { %s200_s14 = sshll.u32 %s2991_s13, 4  ;;  %s224_s16 = sshll.u32 %s2992_s15, 4  ;;  %s201_s14 = int_to_ptr.vmem [resolvable:$true] %s200_s14  ;;  %s225_s16 = int_to_ptr.vmem [resolvable:$true] %s224_s16 }
  0x4c   : > { %s2821_s8 = scalar_lea.hbm %s3355_s2, 128 }
  0x4d   : > { %p2822_p13 = scmp.ne.s32.totalorder %s3355_s2, %s2821_s8  ;;  %p2828_p3 = scmp.lt.u32.totalorder %s2821_s8, %s3355_s2 }
  0x4f   : > { %p2824_p1 = pnand %p2822_p13, %p3112_p0 }
  0x51   : > { %p2825_p5 = pneg %p2824_p1 }
  0x53   : > { %p2830_p8 = pnand %p2828_p3, %p2825_p5 }
  0x55   : > { %2833 = shalt.err (!%p2830_p8)
}
  0x56   : > { %s2834_s10 = scalar_lea.vmem %s201_s14, 128  ;;  %p2842_p6 = scmp.lt.s32.totalorder %s201_s14, %s201_s14 }
  0x57   : > { %p2835_p10 = scmp.ne.s32.totalorder %s201_s14, %s2834_s10  ;;  %p2843_p7 = scmp.lt.s32.totalorder %s2834_s10, %s2834_s10 }
  0x59   : > { %p2837_p2 = pnand %p2835_p10, %p3112_p0  ;;  %p2844_p9 = por %p2843_p7, %p2842_p6 }
  0x5b   : > { %p2838_p4 = pneg %p2837_p2 }
  0x5d   : > { %p2845_p11 = pnand %p2844_p9, %p2838_p4 }
  0x5f   : > { %2848 = shalt.err (!%p2845_p11)
}
  0x60   : > { %2669 = dma.hbm_to_vmem [thread:$0]  (!%p3098_p12), %s3355_s2, 128, %s201_s14, [#allocation7]  }
  0x61   : > { %s2849_s28 = scalar_lea.hbm %s3357_s4, 64 }
  0x62   : > { %p2850_p13 = scmp.ne.s32.totalorder %s3357_s4, %s2849_s28  ;;  %p2856_p3 = scmp.lt.u32.totalorder %s2849_s28, %s3357_s4 }
  0x64   : > { %p2852_p1 = pnand %p2850_p13, %p3112_p0 }
  0x66   : > { %p2853_p5 = pneg %p2852_p1 }
  0x68   : > { %p2858_p8 = pnand %p2856_p3, %p2853_p5 }
  0x6a   : > { %2861 = shalt.err (!%p2858_p8)
}
  0x6b   : > { %s2862_s15 = scalar_lea.vmem %s225_s16, 64  ;;  %p2870_p6 = scmp.lt.s32.totalorder %s225_s16, %s225_s16 }
  0x6c   : > { %p2863_p10 = scmp.ne.s32.totalorder %s225_s16, %s2862_s15  ;;  %p2871_p7 = scmp.lt.s32.totalorder %s2862_s15, %s2862_s15 }
  0x6e   : > { %p2865_p2 = pnand %p2863_p10, %p3112_p0  ;;  %p2872_p9 = por %p2871_p7, %p2870_p6 }
  0x70   : > { %p2866_p4 = pneg %p2865_p2 }
  0x72   : > { %p2873_p11 = pnand %p2872_p9, %p2866_p4 }
  0x74   : > { %2876 = shalt.err (!%p2873_p11)
}
  0x75   : > { %2675 = dma.hbm_to_vmem [thread:$0]  (!%p3098_p12), %s3357_s4, 64, %s225_s16, [#allocation10]  }
  0x76   : > { %p2087_p13 = scmp.ge.s32.totalorder %s2985_s23, 2 }
  0x77   : > { %p3374_p1 = scmp.ne.s32.totalorder (!%p2087_p13), %s3367_s27, 0 }
  0x78   : > { %231 = sbr.rel (%p2087_p13) target bundleno = 159 (0x9f), region = 32 }
  0x7f   : > { %234 = sbr.rel (!%p3374_p1) target bundleno = 159 (0x9f), region = 36  ;;  %s235_s17 = sand.u32 (%p3374_p1), 1, %s2973_s20  }
  0x80   : > { %s2088_s26 = sshll.u32 (%p3374_p1), %s235_s17, 5  ;;  %s3191_s8 = scalar_lea.sflag (%p3374_p1), [#allocation4], %s235_s17 }
  0x81   : > { %s239_s10 = scalar_lea.vmem (%p3374_p1), [#allocation3], %s2088_s26 }
  0x86   : > { %245 = vsyncadd %s3191_s8, 384  ;;  %s2089_s11 = sshll.u32 %s2981_s22, 6  ;;  %s252_s1 = sshll.u32 %s239_s10, 4  ;;  %s3200_s1 = int_to_ptr.vmem [resolvable:$true] %s252_s1 }
  0x87   : > { %s3198_s16 = scalar_lea.hbm %s3353_s0, %s2089_s11  ;;  %s2879_s7 = scalar_lea.hbm %s3353_s0, 256 }
  0x88   : > { %s2877_s27 = scalar_lea.hbm %s3198_s16, 128  ;;  %p2880_p0 = scmp.lt.u32.totalorder %s3198_s16, %s3353_s0 }
  0x89   : > { %p2878_p12 = scmp.ne.s32.totalorder %s3198_s16, %s2877_s27  ;;  %p2881_p5 = scmp.lt.u32.totalorder %s2879_s7, %s2877_s27 }
  0x8a   : > { %p2883_p8 = scmp.lt.u32.totalorder %s2877_s27, %s3198_s16 }
  0x8b   : > { %p2882_p3 = por %p2881_p5, %p2880_p0 }
  0x8d   : > { %p2884_p10 = por %p2883_p8, %p2882_p3 }
  0x8f   : > { %p2885_p2 = pnand %p2884_p10, %p2878_p12 }
  0x91   : > { %2888 = shalt.err (!%p2885_p2)
}
  0x92   : > { %s2889_s13 = scalar_lea.vmem %s3200_s1, 128  ;;  %s2993_s15 = smov [#allocation3]  }
  0x93   : > { %p2890_p4 = scmp.ne.s32.totalorder %s3200_s1, %s2889_s13  ;;  %s2891_s14 = sshll.u32 %s2993_s15, 4  ;;  %s2892_s14 = int_to_ptr.vmem [resolvable:$false] %s2891_s14 }
  0x94   : > { %s2893_s18 = scalar_lea.vmem %s2892_s14, 1024  ;;  %p2894_p6 = scmp.lt.s32.totalorder %s3200_s1, %s2892_s14 }
  0x95   : > { %p2895_p7 = scmp.lt.s32.totalorder %s2893_s18, %s2889_s13 }
  0x97   : > { %p2896_p9 = por %p2895_p7, %p2894_p6 }
  0x99   : > { %p2897_p11 = pnand %p2896_p9, %p2890_p4 }
  0x9b   : > { %2900 = shalt.err (!%p2897_p11)
}
  0x9c   : > { %s2994_s17 = smov 128   ;;  %s2995_s26 = smov 64  }
  0x9d   : > { %s2996_s10 = smov 4  }
  0x9e   : > { %258 = dma.hbm_to_vmem [thread:$0]  %s3198_s16, 128, %s3200_s1, %s3191_s8, %s2994_s17, %s2995_s26, %s2996_s10  }
  0x9f PF: > { %p3375_p13 = scmp.ne.s32.totalorder %s3370_s6, 0 }
  0xa0   : > { %s266_s11 = sand.u32 (!%p3375_p13), 1, %s2969_s19   ;;  %p3376_p1 = scmp.ne.s32.totalorder (!%p3375_p13), %s3368_s29, 0 }
  0xa1   : > { %264 = sbr.rel (%p3375_p13) target bundleno = 1385 (0x569), region = 40  ;;  %s2091_s25 = sshll.u32 (!%p3375_p13), %s266_s11, 5 }
  0xa2   : > { %s267_s5 = scalar_lea.sflag (!%p3375_p13), [#allocation4], %s266_s11  ;;  %s3221_s27 = scalar_lea.vmem (!%p3375_p13), [#allocation3], %s2091_s25 }
  0xa8   : > { %2948 = dma.done.wait (%p3376_p1), %s267_s5, 512  }
  0xa9   : > { %2950 = vsyncadd (%p3376_p1), %s267_s5, 4294966784  ;;  %p3377_p12 = scmp.eq.s32.totalorder %s3062_s24, 0 }
  0xab   : > { %2952 = dma.done.wait (%p3377_p12), [#allocation7], 640   ;;  %p3378_p0 = pmov %p3377_p12 }
  0xad   : > { %2954 = vsyncadd (%p3378_p0), [#allocation7], 4294966656  ;;  %p3379_p5 = pmov %p3378_p0 }
  0xae   : > { %p3380_p3 = pmov %p3378_p0 }
  0xaf   : > { %2956 = dma.done.wait (%p3379_p5), [#allocation10], 65600  }
  0xb0   : > { %2958 = vsyncadd (%p3380_p3), [#allocation10], 4294901696  ;;  %p2096_p8 = scmp.ne.s32.totalorder %s2977_s21, 0 }
  0xb1   : > { %vm319_vm0 = vcmask (!%p2096_p8), 31744   ;;  %v2997_v0 = vmov (!%p2096_p8), 0.0  }
  0xb2   : > { %318 = sbr.rel (%p2096_p8) target bundleno = 185 (0xb9), region = 64  ;;  %320 = vst.msk [vmem:[#allocation2] sm:$0xff] (!%p2096_p8), %vm319_vm0, %v2997_v0 }
  0xb9 PF: > { %v321_v1 = vld [vmem:[%s3221_s27] sm:$0xf]  ;;  %vm330_vm1 = vcmask 1043456   ;;  %v323_v2 = vld [vmem:[%s3221_s27 + $0x8] sm:$0xf]  ;;  %v363_v17 = vlaneseq  ;;  %vm397_vm2 = vcmask 1041409  }
  0xba   : > { %v331_v3 = vsel %vm330_vm1, %v321_v1, 0.0  ;;  %v337_v4 = vsel %vm330_vm1, %v323_v2, 0.0  ;;  %v322_v5 = vld [vmem:[%s3221_s27 + $0x4] sm:$0xf]  ;;  %v324_v6 = vld [vmem:[%s3221_s27 + $0xc] sm:$0xf] }
  0xbb   : > { %332 = vadd.xlane.f32.xlu0 %v331_v3  ;;  %338 = vadd.xlane.f32.xlu1 %v337_v4  ;;  %v334_v7 = vsel %vm330_vm1, %v322_v5, 0.0  ;;  %v340_v8 = vsel %vm330_vm1, %v324_v6, 0.0  ;;  %v325_v9 = vld [vmem:[%s3221_s27 + $0x10] sm:$0xf]  ;;  %v326_v10 = vld [vmem:[%s3221_s27 + $0x14] sm:$0xf] }
  0xbc   : > { %v343_v11 = vsel %vm330_vm1, %v325_v9, 0.0  ;;  %v346_v12 = vsel %vm330_vm1, %v326_v10, 0.0  ;;  %v327_v13 = vld [vmem:[%s3221_s27 + $0x18] sm:$0xf]  ;;  %v328_v14 = vld [vmem:[%s3221_s27 + $0x1c] sm:$0xf] }
  0xbd   : > { %v349_v15 = vsel %vm330_vm1, %v327_v13, 0.0  ;;  %v352_v16 = vsel %vm330_vm1, %v328_v14, 0.0  ;;  %v364_v18 = vand.u32 127, %v363_v17  ;;  %v3252_v19 = vshrl.u32 %v363_v17, 7  ;;  %v329_v42 = vld [vmem:[#allocation2] sm:$0xff]  ;;  %p2097_p10 = scmp.ne.s32.totalorder %s2977_s21, 1 }
  0xbe   : > { %vm399_vm3 = vcmask 1042434   ;;  %vm401_vm4 = vcmask 1043459   ;;  %vm403_vm5 = vcmask 1044484   ;;  %vm405_vm6 = vcmask 1045509   ;;  %v421_v46 = vld [vmem:[#allocation6] sm:$0xff] (!%p2097_p10)  ;;  %v422_v48 = vld [vmem:[#allocation6 + $0x8] sm:$0xff] (!%p2097_p10) }
  0xbf   : > { %335 = vadd.xlane.f32.xlu0 %v334_v7  ;;  %341 = vadd.xlane.f32.xlu1 %v340_v8  ;;  %v367_v22 = vsub.s32 %v364_v18, %v3252_v19  ;;  %vm407_vm7 = vcmask 1046534   ;;  %vm409_vm8 = vcmask 1047559   ;;  %vm413_vm9 = vcmask 31744   ;;  %v423_v53 = vld [vmem:[#allocation6 + $0x10] sm:$0xff] (!%p2097_p10)  ;;  %v424_v54 = vld [vmem:[#allocation6 + $0x18] sm:$0xff] (!%p2097_p10)  ;;  %v781_v58 = vld [vmem:[#allocation9 + $0x18] sm:$0xff] (!%p2097_p10) }
  0xc0   : > { %v471_v49 = vcombine.high (!%p2097_p10), %v421_v46, %v421_v46  ;;  %v2998_v50 = vmov (!%p2097_p10), 0.0   ;;  %v472_v52 = vcombine.high (!%p2097_p10), %v422_v48, %v422_v48  ;;  %v473_v55 = vcombine.high (!%p2097_p10), %v423_v53, %v423_v53  ;;  %v779_v56 = vld [vmem:[#allocation9 + $0x8] sm:$0xff] (!%p2097_p10)  ;;  %v785_v60 = vld [vmem:[#allocation9 + $0x38] sm:$0xff] (!%p2097_p10)  ;;  %v778_v61 = vld [vmem:[#allocation9] sm:$0xff] (!%p2097_p10) }
  0xc1   : > { %558 = vmatprep.mubr.f32.mxu0 (!%p2097_p10), %v2998_v50  ;;  %629 = vmatprep.mubr.f32.mxu1 (!%p2097_p10), %v2998_v50  ;;  %v783_v57 = vld [vmem:[#allocation9 + $0x28] sm:$0xff] (!%p2097_p10)  ;;  %v474_v59 = vcombine.high (!%p2097_p10), %v424_v54, %v424_v54  ;;  %v782_v62 = vld [vmem:[#allocation9 + $0x20] sm:$0xff] (!%p2097_p10)  ;;  %v780_v63 = vld [vmem:[#allocation9 + $0x10] sm:$0xff] (!%p2097_p10)  ;;  %v2372_v6 = vpack.c.bf16 (!%p2097_p10), %v785_v60, %v781_v58 }
  0xc2   : > { %2098 = vmatprep.subr.msk.mxu0 (!%p2097_p10), %vm330_vm1, %v471_v49  ;;  %2101 = vmatprep.subr.msk.mxu1 (!%p2097_p10), %vm330_vm1, %v472_v52  ;;  %v784_v0 = vld [vmem:[#allocation9 + $0x30] sm:$0xff] (!%p2097_p10)  ;;  %v787_v1 = vld [vmem:[#allocation9 + $0x48] sm:$0xff] (!%p2097_p10)  ;;  %v2116_v2 = vpack.c.bf16 (!%p2097_p10), %v783_v57, %v779_v56  ;;  %v789_v4 = vld [vmem:[#allocation9 + $0x58] sm:$0xff] (!%p2097_p10)  ;;  %v2118_v7 = vpack.c.bf16 (!%p2097_p10), %v782_v62, %v778_v61 }
  0xc3   : > { %344 = vadd.xlane.f32.xlu0 %v343_v11  ;;  %347 = vadd.xlane.f32.xlu1 %v346_v12  ;;  %v791_v3 = vld [vmem:[#allocation9 + $0x68] sm:$0xff] (!%p2097_p10)  ;;  %v793_v5 = vld [vmem:[#allocation9 + $0x78] sm:$0xff] (!%p2097_p10)  ;;  %v2374_v8 = vpack.c.bf16 (!%p2097_p10), %v784_v0, %v780_v63  ;;  %v786_v9 = vld [vmem:[#allocation9 + $0x40] sm:$0xff] (!%p2097_p10) }
  0xc4   : > { %2099 = vmatpush1.msk.msra.mxu0 (!%p2097_p10), %vm330_vm1, %v421_v46  ;;  %2102 = vmatpush1.msk.msra.mxu1 (!%p2097_p10), %vm330_vm1, %v422_v48  ;;  %v790_v10 = vld [vmem:[#allocation9 + $0x60] sm:$0xff] (!%p2097_p10)  ;;  %v2120_v11 = vpack.c.bf16 (!%p2097_p10), %v791_v3, %v787_v1  ;;  %v2376_v12 = vpack.c.bf16 (!%p2097_p10), %v793_v5, %v789_v4  ;;  %v788_v13 = vld [vmem:[#allocation9 + $0x50] sm:$0xff] (!%p2097_p10)  ;;  %v797_v17 = vld [vmem:[#allocation9 + $0x98] sm:$0xff] (!%p2097_p10) }
  0xc5   : > { %2104 = vmatprep.subr.msk.mxu0 (!%p2097_p10), %vm330_vm1, %v473_v55  ;;  %2107 = vmatprep.subr.msk.mxu1 (!%p2097_p10), %vm330_vm1, %v474_v59  ;;  %v792_v14 = vld [vmem:[#allocation9 + $0x70] sm:$0xff] (!%p2097_p10)  ;;  %v801_v18 = vld [vmem:[#allocation9 + $0xb8] sm:$0xff] (!%p2097_p10)  ;;  %v810_v46 = vld [vmem:[#allocation9 + $0x100] sm:$0xff] (!%p2097_p10) }
  0xc6   : > { %v819_v52 = vld [vmem:[#allocation9 + $0x148] sm:$0xff] (!%p2097_p10)  ;;  %v825_v55 = vld [vmem:[#allocation9 + $0x178] sm:$0xff] (!%p2097_p10)  ;;  %v818_v58 = vld [vmem:[#allocation9 + $0x140] sm:$0xff] (!%p2097_p10) }
  0xc7   : > { %350 = vadd.xlane.f32.xlu0 %v349_v15  ;;  %353 = vadd.xlane.f32.xlu1 %v352_v16  ;;  %v795_v15 = vld [vmem:[#allocation9 + $0x88] sm:$0xff] (!%p2097_p10)  ;;  %v822_v59 = vld [vmem:[#allocation9 + $0x160] sm:$0xff] (!%p2097_p10)  ;;  %v820_v62 = vld [vmem:[#allocation9 + $0x150] sm:$0xff] (!%p2097_p10) }
  0xc8   : > { %v799_v16 = vld [vmem:[#allocation9 + $0xa8] sm:$0xff] (!%p2097_p10)  ;;  %v824_v63 = vld [vmem:[#allocation9 + $0x170] sm:$0xff] (!%p2097_p10)  ;;  %v833_v3 = vld [vmem:[#allocation9 + $0x1b8] sm:$0xff] (!%p2097_p10)  ;;  %v2138_v4 = vpack.c.bf16 (!%p2097_p10), %v822_v59, %v818_v58 }
  0xc9   : > { %v827_v0 = vld [vmem:[#allocation9 + $0x188] sm:$0xff] (!%p2097_p10)  ;;  %v2394_v5 = vpack.c.bf16 (!%p2097_p10), %v824_v63, %v820_v62  ;;  %v860_v59 = vld [vmem:[#allocation9 + $0x290] sm:$0xff] (!%p2097_p10)  ;;  %v869_v63 = vld [vmem:[#allocation9 + $0x2d8] sm:$0xff] (!%p2097_p10) }
  0xca   : > { %v831_v1 = vld [vmem:[#allocation9 + $0x1a8] sm:$0xff] (!%p2097_p10) }
  0xcb   : > { %v871_v62 = vld [vmem:[#allocation9 + $0x2e8] sm:$0xff] (!%p2097_p10) }
 0x148   : > { %v333_v20 = vpop.xlane.xlu0 %332  ;;  %v339_v21 = vpop.xlane.xlu1 %338 }
 0x149   : > { %v368_v25 = vrot.slane %v333_v20, %v367_v22  ;;  %v376_v28 = vrot.slane %v339_v21, %v367_v22  ;;  %v2122_v20 = vpack.c.bf16 (!%p2097_p10), %v790_v10, %v786_v9  ;;  %v2378_v21 = vpack.c.bf16 (!%p2097_p10), %v792_v14, %v788_v13  ;;  %v828_v10 = vld [vmem:[#allocation9 + $0x190] sm:$0xff] (!%p2097_p10)  ;;  %v839_v13 = vld [vmem:[#allocation9 + $0x1e8] sm:$0xff] (!%p2097_p10)  ;;  %v837_v14 = vld [vmem:[#allocation9 + $0x1d8] sm:$0xff] (!%p2097_p10) }
 0x14c   : > { %v336_v23 = vpop.xlane.xlu0 %335  ;;  %v342_v24 = vpop.xlane.xlu1 %341 }
 0x14d   : > { %v372_v26 = vrot.slane %v336_v23, %v367_v22  ;;  %v380_v27 = vrot.slane %v342_v24, %v367_v22  ;;  %v798_v23 = vld [vmem:[#allocation9 + $0xa0] sm:$0xff] (!%p2097_p10)  ;;  %v2124_v24 = vpack.c.bf16 (!%p2097_p10), %v799_v16, %v795_v15  ;;  %v841_v15 = vld [vmem:[#allocation9 + $0x1f8] sm:$0xff] (!%p2097_p10) }
 0x14f   : > { %v398_v29 = vsel %vm397_vm2, %v372_v26, %v368_v25  ;;  %v2380_v25 = vpack.c.bf16 (!%p2097_p10), %v801_v18, %v797_v17  ;;  %v796_v26 = vld [vmem:[#allocation9 + $0x90] sm:$0xff] (!%p2097_p10)  ;;  %v834_v18 = vld [vmem:[#allocation9 + $0x1c0] sm:$0xff] (!%p2097_p10) }
 0x150   : > { %v400_v30 = vsel %vm399_vm3, %v376_v28, %v398_v29  ;;  %v345_v31 = vpop.xlane.xlu0 %344  ;;  %v348_v32 = vpop.xlane.xlu1 %347  ;;  %v803_v28 = vld [vmem:[#allocation9 + $0xc8] sm:$0xff] (!%p2097_p10) }
 0x151   : > { %v402_v33 = vsel %vm401_vm4, %v380_v27, %v400_v30  ;;  %v384_v34 = vrot.slane %v345_v31, %v367_v22  ;;  %v388_v35 = vrot.slane %v348_v32, %v367_v22  ;;  %v800_v27 = vld [vmem:[#allocation9 + $0xb0] sm:$0xff] (!%p2097_p10)  ;;  %v807_v29 = vld [vmem:[#allocation9 + $0xe8] sm:$0xff] (!%p2097_p10)  ;;  %v805_v30 = vld [vmem:[#allocation9 + $0xd8] sm:$0xff] (!%p2097_p10) }
 0x152   : > { %v809_v31 = vld [vmem:[#allocation9 + $0xf8] sm:$0xff] (!%p2097_p10) }
 0x153   : > { %v404_v36 = vsel %vm403_vm5, %v384_v34, %v402_v33  ;;  %v2382_v33 = vpack.c.bf16 (!%p2097_p10), %v800_v27, %v796_v26  ;;  %v802_v34 = vld [vmem:[#allocation9 + $0xc0] sm:$0xff] (!%p2097_p10)  ;;  %v847_v26 = vld [vmem:[#allocation9 + $0x228] sm:$0xff] (!%p2097_p10)  ;;  %v845_v27 = vld [vmem:[#allocation9 + $0x218] sm:$0xff] (!%p2097_p10) }
 0x154   : > { %v351_v37 = vpop.xlane.xlu0 %350  ;;  %v354_v38 = vpop.xlane.xlu1 %353  ;;  %v406_v41 = vsel %vm405_vm6, %v388_v35, %v404_v36  ;;  %v806_v35 = vld [vmem:[#allocation9 + $0xe0] sm:$0xff] (!%p2097_p10)  ;;  %v2128_v36 = vpack.c.bf16 (!%p2097_p10), %v807_v29, %v803_v28  ;;  %v849_v28 = vld [vmem:[#allocation9 + $0x238] sm:$0xff] (!%p2097_p10) }
 0x155   : > { %v392_v39 = vrot.slane %v351_v37, %v367_v22  ;;  %v396_v40 = vrot.slane %v354_v38, %v367_v22  ;;  %418 = sbr.rel (%p2097_p10) target bundleno = 1347 (0x543), region = 68  ;;  %v794_v22 = vld [vmem:[#allocation9 + $0x80] sm:$0xff] (!%p2097_p10)  ;;  %v2384_v37 = vpack.c.bf16 (!%p2097_p10), %v809_v31, %v805_v30  ;;  %v804_v38 = vld [vmem:[#allocation9 + $0xd0] sm:$0xff] (!%p2097_p10) }
 0x156   : > { %v2126_v32 = vpack.c.bf16 (!%p2097_p10), %v798_v23, %v794_v22  ;;  %v2400_v22 = vpack.c.bf16 (!%p2097_p10), %v841_v15, %v837_v14  ;;  %v836_v23 = vld [vmem:[#allocation9 + $0x1d0] sm:$0xff] (!%p2097_p10)  ;;  %v842_v31 = vld [vmem:[#allocation9 + $0x200] sm:$0xff] (!%p2097_p10) }
 0x157   : > { %v408_v43 = vsel %vm407_vm7, %v392_v39, %v406_v41  ;;  %v808_v39 = vld [vmem:[#allocation9 + $0xf0] sm:$0xff] (!%p2097_p10)  ;;  %v815_v41 = vld [vmem:[#allocation9 + $0x128] sm:$0xff] (!%p2097_p10)  ;;  %v874_v15 = vld [vmem:[#allocation9 + $0x300] sm:$0xff] (!%p2097_p10) }
 0x158   : > { %v410_v44 = vsel %vm409_vm8, %v396_v40, %v408_v43  ;;  %v811_v40 = vld [vmem:[#allocation9 + $0x108] sm:$0xff] (!%p2097_p10)  ;;  %v817_v43 = vld [vmem:[#allocation9 + $0x138] sm:$0xff] (!%p2097_p10) }
 0x159   : > { %v412_v45 = vadd.f32 %v410_v44, %v329_v42  ;;  %v813_v42 = vld [vmem:[#allocation9 + $0x118] sm:$0xff] (!%p2097_p10)  ;;  %v2130_v44 = vpack.c.bf16 (!%p2097_p10), %v806_v35, %v802_v34  ;;  %v2132_v48 = vpack.c.bf16 (!%p2097_p10), %v815_v41, %v811_v40  ;;  %v2404_v34 = vpack.c.bf16 (!%p2097_p10), %v849_v28, %v845_v27  ;;  %v844_v35 = vld [vmem:[#allocation9 + $0x210] sm:$0xff] (!%p2097_p10)  ;;  %v882_v28 = vld [vmem:[#allocation9 + $0x340] sm:$0xff] (!%p2097_p10) }
 0x15a   : > { %v2388_v49 = vpack.c.bf16 (!%p2097_p10), %v817_v43, %v813_v42  ;;  %v857_v40 = vld [vmem:[#allocation9 + $0x278] sm:$0xff] (!%p2097_p10)  ;;  %v850_v43 = vld [vmem:[#allocation9 + $0x240] sm:$0xff] (!%p2097_p10) }
 0x15b   : > { %414 = vst.msk [vmem:[#allocation2] sm:$0xff] %vm413_vm9, %v412_v45  ;;  %v2386_v45 = vpack.c.bf16 (!%p2097_p10), %v808_v39, %v804_v38  ;;  %v855_v38 = vld [vmem:[#allocation9 + $0x268] sm:$0xff] (!%p2097_p10)  ;;  %v853_v39 = vld [vmem:[#allocation9 + $0x258] sm:$0xff] (!%p2097_p10) }
 0x162   : > { %v419_v47 = vld [vmem:[#allocation2] sm:$0xff] }
 0x163   : > { %v420_v51 = vmul.f32 0.00390625, %v419_v47  ;;  %v814_v47 = vld [vmem:[#allocation9 + $0x120] sm:$0xff] }
 0x164   : > { %v2134_v56 = vpack.c.bf16 %v814_v47, %v810_v46  ;;  %v2408_v46 = vpack.c.bf16 %v857_v40, %v853_v39  ;;  %v852_v47 = vld [vmem:[#allocation9 + $0x250] sm:$0xff]  ;;  %v890_v40 = vld [vmem:[#allocation9 + $0x380] sm:$0xff] }
 0x165   : > { %2100 = vmatmul.mubr.msk.f32.vlgmr.msra.gmra.mrb[0].mxu0 %vm413_vm9, %v420_v51  ;;  %2103 = vmatmul.mubr.msk.f32.vlgmr.msra.gmra.mrb[0].mxu1 %vm413_vm9, %v420_v51 }
 0x166   : > { %700 = vmatprep.mubr.f32.mxu0 %v2998_v50  ;;  %2105 = vmatpush1.msk.msra.mxu0 %vm330_vm1, %v423_v53  ;;  %v823_v53 = vld [vmem:[#allocation9 + $0x168] sm:$0xff] }
 0x167   : > { %2108 = vmatpush1.msk.msra.mxu1 %vm330_vm1, %v424_v54  ;;  %771 = vmatprep.mubr.f32.mxu1 %v2998_v50  ;;  %v812_v50 = vld [vmem:[#allocation9 + $0x110] sm:$0xff]  ;;  %v821_v54 = vld [vmem:[#allocation9 + $0x158] sm:$0xff]  ;;  %v2136_v60 = vpack.c.bf16 %v823_v53, %v819_v52 }
 0x168   : > { %2117 = vmatprep.subr.bf16.mxu0 %v2116_v2  ;;  %2373 = vmatprep.subr.bf16.mxu1 %v2372_v6  ;;  %v2392_v61 = vpack.c.bf16 %v825_v55, %v821_v54  ;;  %v829_v2 = vld [vmem:[#allocation9 + $0x198] sm:$0xff]  ;;  %v826_v6 = vld [vmem:[#allocation9 + $0x180] sm:$0xff] }
 0x169   : > { %2106 = vmatmul.mubr.msk.f32.vlgmr.msra.gmra.mrb[2].mxu0 %vm413_vm9, %v420_v51  ;;  %2109 = vmatmul.mubr.msk.f32.vlgmr.msra.gmra.mrb[2].mxu1 %vm413_vm9, %v420_v51  ;;  %v816_v51 = vld [vmem:[#allocation9 + $0x130] sm:$0xff]  ;;  %v2396_v9 = vpack.c.bf16 %v833_v3, %v829_v2  ;;  %v865_v52 = vld [vmem:[#allocation9 + $0x2b8] sm:$0xff]  ;;  %v858_v55 = vld [vmem:[#allocation9 + $0x280] sm:$0xff] }
 0x16a   : > { %2119 = vmatpush1.bf16.msra.mxu0 %v2118_v7  ;;  %2375 = vmatpush1.bf16.msra.mxu1 %v2374_v8  ;;  %v2390_v57 = vpack.c.bf16 %v816_v51, %v812_v50  ;;  %v830_v7 = vld [vmem:[#allocation9 + $0x1a0] sm:$0xff]  ;;  %v2140_v8 = vpack.c.bf16 %v831_v1, %v827_v0  ;;  %v863_v50 = vld [vmem:[#allocation9 + $0x2a8] sm:$0xff]  ;;  %v861_v51 = vld [vmem:[#allocation9 + $0x298] sm:$0xff] }
 0x16b   : > { %2121 = vmatprep.subr.bf16.mxu0 %v2120_v11  ;;  %2377 = vmatprep.subr.bf16.mxu1 %v2376_v12  ;;  %v832_v11 = vld [vmem:[#allocation9 + $0x1b0] sm:$0xff]  ;;  %v835_v12 = vld [vmem:[#allocation9 + $0x1c8] sm:$0xff]  ;;  %v2142_v16 = vpack.c.bf16 %v830_v7, %v826_v6  ;;  %v2412_v58 = vpack.c.bf16 %v865_v52, %v861_v51  ;;  %v873_v0 = vld [vmem:[#allocation9 + $0x2f8] sm:$0xff] }
 0x16c   : > { %v2398_v17 = vpack.c.bf16 %v832_v11, %v828_v10  ;;  %v866_v3 = vld [vmem:[#allocation9 + $0x2c0] sm:$0xff]  ;;  %v2416_v6 = vpack.c.bf16 %v873_v0, %v869_v63  ;;  %v868_v7 = vld [vmem:[#allocation9 + $0x2d0] sm:$0xff]  ;;  %v879_v10 = vld [vmem:[#allocation9 + $0x328] sm:$0xff] }
 0x16d   : > { %v877_v11 = vld [vmem:[#allocation9 + $0x318] sm:$0xff] }
 0x16e   : > { %2123 = vmatpush1.bf16.msra.mxu0 %v2122_v20  ;;  %2379 = vmatpush1.bf16.msra.mxu1 %v2378_v21  ;;  %v838_v20 = vld [vmem:[#allocation9 + $0x1e0] sm:$0xff]  ;;  %v2144_v21 = vpack.c.bf16 %v839_v13, %v835_v12  ;;  %v881_v12 = vld [vmem:[#allocation9 + $0x338] sm:$0xff] }
 0x16f   : > { %2125 = vmatprep.subr.bf16.mxu0 %v2124_v24  ;;  %2381 = vmatprep.subr.bf16.mxu1 %v2380_v25  ;;  %v840_v24 = vld [vmem:[#allocation9 + $0x1f0] sm:$0xff]  ;;  %v843_v25 = vld [vmem:[#allocation9 + $0x208] sm:$0xff]  ;;  %v2146_v29 = vpack.c.bf16 %v838_v20, %v834_v18  ;;  %v2420_v18 = vpack.c.bf16 %v881_v12, %v877_v11  ;;  %v905_v52 = vld [vmem:[#allocation9 + $0x3f8] sm:$0xff] }
 0x170   : > { %v2402_v30 = vpack.c.bf16 %v840_v24, %v836_v23  ;;  %v876_v20 = vld [vmem:[#allocation9 + $0x310] sm:$0xff]  ;;  %v887_v23 = vld [vmem:[#allocation9 + $0x368] sm:$0xff]  ;;  %v885_v24 = vld [vmem:[#allocation9 + $0x358] sm:$0xff] }
 0x171   : > { %v913_v0 = vld [vmem:[#allocation9 + $0x438] sm:$0xff]  ;;  %v912_v11 = vld [vmem:[#allocation9 + $0x430] sm:$0xff]  ;;  %v915_v12 = vld [vmem:[#allocation9 + $0x448] sm:$0xff] }
 0x172   : > { %2127 = vmatpush1.bf16.msra.mxu0 %v2126_v32  ;;  %2383 = vmatpush1.bf16.msra.mxu1 %v2382_v33  ;;  %v846_v32 = vld [vmem:[#allocation9 + $0x220] sm:$0xff]  ;;  %v2148_v33 = vpack.c.bf16 %v847_v26, %v843_v25  ;;  %v889_v25 = vld [vmem:[#allocation9 + $0x378] sm:$0xff] }
 0x173   : > { %2129 = vmatprep.subr.bf16.mxu0 %v2128_v36  ;;  %2385 = vmatprep.subr.bf16.mxu1 %v2384_v37  ;;  %v848_v36 = vld [vmem:[#allocation9 + $0x230] sm:$0xff]  ;;  %v851_v37 = vld [vmem:[#allocation9 + $0x248] sm:$0xff]  ;;  %v2150_v41 = vpack.c.bf16 %v846_v32, %v842_v31  ;;  %v2424_v31 = vpack.c.bf16 %v889_v25, %v885_v24  ;;  %v914_v25 = vld [vmem:[#allocation9 + $0x440] sm:$0xff] }
 0x174   : > { %v2406_v42 = vpack.c.bf16 %v848_v36, %v844_v35  ;;  %v884_v32 = vld [vmem:[#allocation9 + $0x350] sm:$0xff]  ;;  %v895_v35 = vld [vmem:[#allocation9 + $0x3a8] sm:$0xff]  ;;  %v893_v36 = vld [vmem:[#allocation9 + $0x398] sm:$0xff] }
 0x176   : > { %2131 = vmatpush1.bf16.msra.mxu0 %v2130_v44  ;;  %2387 = vmatpush1.bf16.msra.mxu1 %v2386_v45  ;;  %v854_v44 = vld [vmem:[#allocation9 + $0x260] sm:$0xff]  ;;  %v2152_v45 = vpack.c.bf16 %v855_v38, %v851_v37  ;;  %v897_v37 = vld [vmem:[#allocation9 + $0x3b8] sm:$0xff] }
 0x177   : > { %2133 = vmatprep.subr.bf16.mxu0 %v2132_v48  ;;  %2389 = vmatprep.subr.bf16.mxu1 %v2388_v49  ;;  %v856_v48 = vld [vmem:[#allocation9 + $0x270] sm:$0xff]  ;;  %v859_v49 = vld [vmem:[#allocation9 + $0x288] sm:$0xff]  ;;  %v2154_v53 = vpack.c.bf16 %v854_v44, %v850_v43  ;;  %v894_v43 = vld [vmem:[#allocation9 + $0x3a0] sm:$0xff] }
 0x178   : > { %v2410_v54 = vpack.c.bf16 %v856_v48, %v852_v47  ;;  %v892_v44 = vld [vmem:[#allocation9 + $0x390] sm:$0xff]  ;;  %v899_v48 = vld [vmem:[#allocation9 + $0x3c8] sm:$0xff] }
 0x17a   : > { %2135 = vmatpush1.bf16.msra.mxu0 %v2134_v56  ;;  %2391 = vmatpush1.bf16.msra.mxu1 %v2390_v57  ;;  %v862_v56 = vld [vmem:[#allocation9 + $0x2a0] sm:$0xff]  ;;  %v2156_v57 = vpack.c.bf16 %v863_v50, %v859_v49  ;;  %v903_v49 = vld [vmem:[#allocation9 + $0x3e8] sm:$0xff]  ;;  %v901_v50 = vld [vmem:[#allocation9 + $0x3d8] sm:$0xff] }
 0x17b   : > { %2137 = vmatprep.subr.bf16.mxu0 %v2136_v60  ;;  %2393 = vmatprep.subr.bf16.mxu1 %v2392_v61  ;;  %v864_v60 = vld [vmem:[#allocation9 + $0x2b0] sm:$0xff]  ;;  %v867_v61 = vld [vmem:[#allocation9 + $0x2c8] sm:$0xff]  ;;  %v2158_v1 = vpack.c.bf16 %v862_v56, %v858_v55  ;;  %v2176_v51 = vpack.c.bf16 %v903_v49, %v899_v48  ;;  %v2432_v55 = vpack.c.bf16 %v905_v52, %v901_v50  ;;  %v933_v49 = vld [vmem:[#allocation9 + $0x4d8] sm:$0xff] }
 0x17c   : > { %v2414_v2 = vpack.c.bf16 %v864_v60, %v860_v59  ;;  %v907_v60 = vld [vmem:[#allocation9 + $0x408] sm:$0xff]  ;;  %v937_v50 = vld [vmem:[#allocation9 + $0x4f8] sm:$0xff] }
 0x17d   : > { %v935_v48 = vld [vmem:[#allocation9 + $0x4e8] sm:$0xff] }
 0x17e   : > { %2139 = vmatpush1.bf16.msra.mxu0 %v2138_v4  ;;  %2395 = vmatpush1.bf16.msra.mxu1 %v2394_v5  ;;  %v870_v4 = vld [vmem:[#allocation9 + $0x2e0] sm:$0xff]  ;;  %v2160_v5 = vpack.c.bf16 %v871_v62, %v867_v61  ;;  %v911_v61 = vld [vmem:[#allocation9 + $0x428] sm:$0xff]  ;;  %v909_v62 = vld [vmem:[#allocation9 + $0x418] sm:$0xff] }
 0x17f   : > { %2141 = vmatprep.subr.bf16.mxu0 %v2140_v8  ;;  %2397 = vmatprep.subr.bf16.mxu1 %v2396_v9  ;;  %v872_v8 = vld [vmem:[#allocation9 + $0x2f0] sm:$0xff]  ;;  %v875_v9 = vld [vmem:[#allocation9 + $0x308] sm:$0xff]  ;;  %v2162_v13 = vpack.c.bf16 %v870_v4, %v866_v3  ;;  %v2180_v63 = vpack.c.bf16 %v911_v61, %v907_v60  ;;  %v3270_v3 = vld [vmem:[#allocation8] sm:$0xff]  ;;  %v429_v4 = vsub.s32 0, %v3252_v19 }
 0x180   : > { %v2418_v14 = vpack.c.bf16 %v872_v8, %v868_v7  ;;  %v906_v7 = vld [vmem:[#allocation9 + $0x400] sm:$0xff]  ;;  %v943_v60 = vld [vmem:[#allocation9 + $0x528] sm:$0xff]  ;;  %v941_v61 = vld [vmem:[#allocation9 + $0x518] sm:$0xff] }
 0x181   : > { %v910_v8 = vld [vmem:[#allocation9 + $0x420] sm:$0xff] }
 0x182   : > { %2143 = vmatpush1.bf16.msra.mxu0 %v2142_v16  ;;  %2399 = vmatpush1.bf16.msra.mxu1 %v2398_v17  ;;  %v878_v16 = vld [vmem:[#allocation9 + $0x320] sm:$0xff]  ;;  %v2164_v17 = vpack.c.bf16 %v879_v10, %v875_v9  ;;  %v430_v9 = vrot.slane %v3270_v3, %v429_v4  ;;  %v908_v10 = vld [vmem:[#allocation9 + $0x410] sm:$0xff] }
 0x183   : > { %2145 = vmatprep.subr.bf16.mxu0 %v2144_v21  ;;  %2401 = vmatprep.subr.bf16.mxu1 %v2400_v22  ;;  %v880_v21 = vld [vmem:[#allocation9 + $0x330] sm:$0xff]  ;;  %v883_v22 = vld [vmem:[#allocation9 + $0x348] sm:$0xff]  ;;  %v2166_v26 = vpack.c.bf16 %v878_v16, %v874_v15  ;;  %v917_v15 = vld [vmem:[#allocation9 + $0x458] sm:$0xff]  ;;  %v2438_v24 = vpack.c.bf16 %v912_v11, %v908_v10 }
 0x184   : > { %v2422_v27 = vpack.c.bf16 %v880_v21, %v876_v20  ;;  %v921_v16 = vld [vmem:[#allocation9 + $0x478] sm:$0xff]  ;;  %v944_v10 = vld [vmem:[#allocation9 + $0x530] sm:$0xff]  ;;  %v947_v11 = vld [vmem:[#allocation9 + $0x548] sm:$0xff] }
 0x186   : > { %2147 = vmatpush1.bf16.msra.mxu0 %v2146_v29  ;;  %2403 = vmatpush1.bf16.msra.mxu1 %v2402_v30  ;;  %v886_v29 = vld [vmem:[#allocation9 + $0x360] sm:$0xff]  ;;  %v2168_v30 = vpack.c.bf16 %v887_v23, %v883_v22  ;;  %v2182_v23 = vpack.c.bf16 %v910_v8, %v906_v7 }
 0x187   : > { %2149 = vmatprep.subr.bf16.mxu0 %v2148_v33  ;;  %2405 = vmatprep.subr.bf16.mxu1 %v2404_v34  ;;  %v888_v33 = vld [vmem:[#allocation9 + $0x370] sm:$0xff]  ;;  %v891_v34 = vld [vmem:[#allocation9 + $0x388] sm:$0xff]  ;;  %v2170_v38 = vpack.c.bf16 %v886_v29, %v882_v28  ;;  %v2440_v29 = vpack.c.bf16 %v921_v16, %v917_v15 }
 0x188   : > { %v2426_v39 = vpack.c.bf16 %v888_v33, %v884_v32  ;;  %v923_v32 = vld [vmem:[#allocation9 + $0x488] sm:$0xff] }
 0x189   : > { %v927_v33 = vld [vmem:[#allocation9 + $0x4a8] sm:$0xff] }
 0x18a   : > { %2151 = vmatpush1.bf16.msra.mxu0 %v2150_v41  ;;  %2407 = vmatpush1.bf16.msra.mxu1 %v2406_v42  ;;  %v2172_v41 = vpack.c.bf16 %v895_v35, %v891_v34  ;;  %v2428_v42 = vpack.c.bf16 %v897_v37, %v893_v36  ;;  %v925_v34 = vld [vmem:[#allocation9 + $0x498] sm:$0xff] }
 0x18b   : > { %2153 = vmatprep.subr.bf16.mxu0 %v2152_v45  ;;  %2409 = vmatprep.subr.bf16.mxu1 %v2408_v46  ;;  %v896_v45 = vld [vmem:[#allocation9 + $0x3b0] sm:$0xff]  ;;  %v2174_v46 = vpack.c.bf16 %v894_v43, %v890_v40  ;;  %v929_v35 = vld [vmem:[#allocation9 + $0x4b8] sm:$0xff]  ;;  %v2188_v43 = vpack.c.bf16 %v927_v33, %v923_v32  ;;  %v958_v32 = vld [vmem:[#allocation9 + $0x5a0] sm:$0xff] }
 0x18c   : > { %v2430_v47 = vpack.c.bf16 %v896_v45, %v892_v44  ;;  %v2444_v44 = vpack.c.bf16 %v929_v35, %v925_v34  ;;  %v924_v45 = vld [vmem:[#allocation9 + $0x490] sm:$0xff] }
 0x18d   : > { %v956_v35 = vld [vmem:[#allocation9 + $0x590] sm:$0xff] }
 0x18e   : > { %2155 = vmatpush1.bf16.msra.mxu0 %v2154_v53  ;;  %2411 = vmatpush1.bf16.msra.mxu1 %v2410_v54  ;;  %v898_v53 = vld [vmem:[#allocation9 + $0x3c0] sm:$0xff] }
 0x18f   : > { %2157 = vmatprep.subr.bf16.mxu0 %v2156_v57  ;;  %2413 = vmatprep.subr.bf16.mxu1 %v2412_v58  ;;  %v902_v54 = vld [vmem:[#allocation9 + $0x3e0] sm:$0xff]  ;;  %v900_v57 = vld [vmem:[#allocation9 + $0x3d0] sm:$0xff] }
 0x190   : > { %v2178_v56 = vpack.c.bf16 %v902_v54, %v898_v53  ;;  %v904_v58 = vld [vmem:[#allocation9 + $0x3f0] sm:$0xff]  ;;  %v930_v53 = vld [vmem:[#allocation9 + $0x4c0] sm:$0xff] }
 0x191   : > { %v2434_v59 = vpack.c.bf16 %v904_v58, %v900_v57  ;;  %v934_v54 = vld [vmem:[#allocation9 + $0x4e0] sm:$0xff]  ;;  %v932_v57 = vld [vmem:[#allocation9 + $0x4d0] sm:$0xff] }
 0x192   : > { %2159 = vmatpush1.bf16.msra.mxu0 %v2158_v1  ;;  %2415 = vmatpush1.bf16.msra.mxu1 %v2414_v2  ;;  %v2436_v1 = vpack.c.bf16 %v913_v0, %v909_v62  ;;  %v433_v2 = vsub.s32 1, %v3252_v19  ;;  %v936_v58 = vld [vmem:[#allocation9 + $0x4f0] sm:$0xff]  ;;  %v945_v62 = vld [vmem:[#allocation9 + $0x538] sm:$0xff] }
 0x193   : > { %2161 = vmatprep.subr.bf16.mxu0 %v2160_v5  ;;  %2417 = vmatprep.subr.bf16.mxu1 %v2416_v6  ;;  %v441_v5 = vsub.s32 3, %v3252_v19  ;;  %v2450_v0 = vpack.c.bf16 %v936_v58, %v932_v57  ;;  %v2452_v8 = vpack.c.bf16 %v945_v62, %v941_v61 }
 0x194   : > { %v434_v6 = vrot.slane %v3270_v3, %v433_v2 }
 0x196   : > { %2163 = vmatpush1.bf16.msra.mxu0 %v2162_v13  ;;  %2419 = vmatpush1.bf16.msra.mxu1 %v2418_v14  ;;  %v919_v14 = vld [vmem:[#allocation9 + $0x468] sm:$0xff] }
 0x197   : > { %2165 = vmatprep.subr.bf16.mxu0 %v2164_v17  ;;  %2421 = vmatprep.subr.bf16.mxu1 %v2420_v18  ;;  %v442_v18 = vrot.slane %v3270_v3, %v441_v5  ;;  %v2184_v28 = vpack.c.bf16 %v919_v14, %v915_v12  ;;  %v951_v12 = vld [vmem:[#allocation9 + $0x568] sm:$0xff]  ;;  %v953_v14 = vld [vmem:[#allocation9 + $0x578] sm:$0xff] }
 0x19a   : > { %2167 = vmatpush1.bf16.msra.mxu0 %v2166_v26  ;;  %2423 = vmatpush1.bf16.msra.mxu1 %v2422_v27  ;;  %v918_v26 = vld [vmem:[#allocation9 + $0x460] sm:$0xff] }
 0x19b   : > { %2169 = vmatprep.subr.bf16.mxu0 %v2168_v30  ;;  %2425 = vmatprep.subr.bf16.mxu1 %v2424_v31  ;;  %v916_v30 = vld [vmem:[#allocation9 + $0x450] sm:$0xff] }
 0x19c   : > { %v920_v31 = vld [vmem:[#allocation9 + $0x470] sm:$0xff] }
 0x19d   : > { %v2442_v40 = vpack.c.bf16 %v920_v31, %v916_v30  ;;  %v954_v31 = vld [vmem:[#allocation9 + $0x580] sm:$0xff] }
 0x19e   : > { %2171 = vmatpush1.bf16.msra.mxu0 %v2170_v38  ;;  %2427 = vmatpush1.bf16.msra.mxu1 %v2426_v39  ;;  %v2186_v39 = vpack.c.bf16 %v918_v26, %v914_v25  ;;  %v955_v25 = vld [vmem:[#allocation9 + $0x588] sm:$0xff] }
 0x19f   : > { %2173 = vmatprep.subr.bf16.mxu0 %v2172_v41  ;;  %2429 = vmatprep.subr.bf16.mxu1 %v2428_v42  ;;  %v922_v41 = vld [vmem:[#allocation9 + $0x480] sm:$0xff]  ;;  %v959_v26 = vld [vmem:[#allocation9 + $0x5a8] sm:$0xff] }
 0x1a0   : > { %v926_v42 = vld [vmem:[#allocation9 + $0x4a0] sm:$0xff]  ;;  %v2204_v33 = vpack.c.bf16 %v959_v26, %v955_v25 }
 0x1a1   : > { %v986_v25 = vld [vmem:[#allocation9 + $0x680] sm:$0xff] }
 0x1a2   : > { %2175 = vmatpush1.bf16.msra.mxu0 %v2174_v46  ;;  %2431 = vmatpush1.bf16.msra.mxu1 %v2430_v47  ;;  %v928_v46 = vld [vmem:[#allocation9 + $0x4b0] sm:$0xff]  ;;  %v931_v47 = vld [vmem:[#allocation9 + $0x4c8] sm:$0xff]  ;;  %v990_v26 = vld [vmem:[#allocation9 + $0x6a0] sm:$0xff] }
 0x1a3   : > { %2177 = vmatprep.subr.bf16.mxu0 %v2176_v51  ;;  %2433 = vmatprep.subr.bf16.mxu1 %v2432_v55  ;;  %v2190_v51 = vpack.c.bf16 %v926_v42, %v922_v41  ;;  %v2446_v52 = vpack.c.bf16 %v928_v46, %v924_v45  ;;  %v2192_v55 = vpack.c.bf16 %v935_v48, %v931_v47  ;;  %v965_v41 = vld [vmem:[#allocation9 + $0x5d8] sm:$0xff]  ;;  %v962_v45 = vld [vmem:[#allocation9 + $0x5c0] sm:$0xff] }
 0x1a4   : > { %v969_v42 = vld [vmem:[#allocation9 + $0x5f8] sm:$0xff]  ;;  %v966_v46 = vld [vmem:[#allocation9 + $0x5e0] sm:$0xff] }
 0x1a5   : > { %v2210_v57 = vpack.c.bf16 %v966_v46, %v962_v45  ;;  %v1003_v45 = vld [vmem:[#allocation9 + $0x708] sm:$0xff] }
 0x1a6   : > { %2179 = vmatpush1.bf16.msra.mxu0 %v2178_v56  ;;  %2435 = vmatpush1.bf16.msra.mxu1 %v2434_v59  ;;  %v2448_v56 = vpack.c.bf16 %v937_v50, %v933_v49  ;;  %v939_v59 = vld [vmem:[#allocation9 + $0x508] sm:$0xff]  ;;  %v2464_v49 = vpack.c.bf16 %v969_v42, %v965_v41  ;;  %v964_v50 = vld [vmem:[#allocation9 + $0x5d0] sm:$0xff] }
 0x1a7   : > { %2181 = vmatprep.subr.bf16.mxu0 %v2180_v63  ;;  %2437 = vmatprep.subr.bf16.mxu1 %v2436_v1  ;;  %v2194_v63 = vpack.c.bf16 %v934_v54, %v930_v53  ;;  %v938_v1 = vld [vmem:[#allocation9 + $0x500] sm:$0xff]  ;;  %v2196_v7 = vpack.c.bf16 %v943_v60, %v939_v59  ;;  %v975_v54 = vld [vmem:[#allocation9 + $0x628] sm:$0xff] }
 0x1a8   : > { %v970_v59 = vld [vmem:[#allocation9 + $0x600] sm:$0xff]  ;;  %v1007_v46 = vld [vmem:[#allocation9 + $0x728] sm:$0xff] }
 0x1a9   : > { %v974_v60 = vld [vmem:[#allocation9 + $0x620] sm:$0xff] }
 0x238   : > { %v560_v13 = vpop.f32.mrb[0].mxu0  ;;  %v3280_v17 = vpop.f32.mrb[0].mxu1 }
 0x239   : > { %v562_v20 = vpop.f32.mrb[1].mxu0  ;;  %v633_v21 = vpop.f32.mrb[1].mxu1  ;;  %v561_v27 = vadd.f32 %v560_v13, %v430_v9  ;;  %v940_v9 = vld [vmem:[#allocation9 + $0x510] sm:$0xff]  ;;  %v949_v13 = vld [vmem:[#allocation9 + $0x558] sm:$0xff] }
 0x23a   : > { %v563_v22 = vadd.f32 %v562_v20, %v434_v6  ;;  %v634_v36 = vadd.f32 %v633_v21, %v442_v18  ;;  %v942_v6 = vld [vmem:[#allocation9 + $0x520] sm:$0xff]  ;;  %v2454_v16 = vpack.c.bf16 %v944_v10, %v940_v9  ;;  %v2200_v21 = vpack.c.bf16 %v951_v12, %v947_v11 }
 0x23b   : > { %v2198_v15 = vpack.c.bf16 %v942_v6, %v938_v1  ;;  %v946_v18 = vld [vmem:[#allocation9 + $0x540] sm:$0xff]  ;;  %v979_v1 = vld [vmem:[#allocation9 + $0x648] sm:$0xff]  ;;  %v2214_v9 = vpack.c.bf16 %v974_v60, %v970_v59 }
 0x23c   : > { %1376 = vmatprep.mubr.f32.mxu0 %v563_v22  ;;  %1660 = vmatprep.mubr.f32.mxu1 %v563_v22  ;;  %v3285_v37 = vpop.f32.mrb[2].mxu0  ;;  %v950_v20 = vld [vmem:[#allocation9 + $0x560] sm:$0xff]  ;;  %v2456_v22 = vpack.c.bf16 %v953_v14, %v949_v13  ;;  %v3289_v47 = vpop.f32.mrb[2].mxu1  ;;  %v983_v6 = vld [vmem:[#allocation9 + $0x668] sm:$0xff] }
 0x23d   : > { %1377 = vmatmul.mubr.f32.vlgmr.msra.gmra.mrb[4].mxu0 %v561_v27  ;;  %1661 = vmatmul.mubr.f32.vlgmr.msra.gmra.mrb[4].mxu1 %v561_v27  ;;  %v3287_v38 = vpop.f32.mrb[3].mxu0  ;;  %v957_v27 = vld [vmem:[#allocation9 + $0x598] sm:$0xff]  ;;  %v3291_v53 = vpop.f32.mrb[3].mxu1  ;;  %v978_v11 = vld [vmem:[#allocation9 + $0x640] sm:$0xff]  ;;  %v2216_v13 = vpack.c.bf16 %v983_v6, %v979_v1  ;;  %v1011_v59 = vld [vmem:[#allocation9 + $0x748] sm:$0xff] }
 0x23e   : > { %2183 = vmatpush1.bf16.msra.mxu0 %v2182_v23  ;;  %2439 = vmatpush1.bf16.msra.mxu1 %v2438_v24  ;;  %v948_v23 = vld [vmem:[#allocation9 + $0x550] sm:$0xff]  ;;  %v982_v12 = vld [vmem:[#allocation9 + $0x660] sm:$0xff]  ;;  %v1015_v60 = vld [vmem:[#allocation9 + $0x768] sm:$0xff] }
 0x23f   : > { %2185 = vmatprep.subr.bf16.mxu0 %v2184_v28  ;;  %2441 = vmatprep.subr.bf16.mxu1 %v2440_v29  ;;  %v952_v24 = vld [vmem:[#allocation9 + $0x570] sm:$0xff]  ;;  %v961_v28 = vld [vmem:[#allocation9 + $0x5b8] sm:$0xff]  ;;  %v2202_v29 = vpack.c.bf16 %v950_v20, %v946_v18  ;;  %v987_v18 = vld [vmem:[#allocation9 + $0x688] sm:$0xff] }
 0x240   : > { %1447 = vmatprep.mubr.f32.mxu0 %v634_v36  ;;  %1731 = vmatprep.mubr.f32.mxu1 %v634_v36  ;;  %v2458_v30 = vpack.c.bf16 %v952_v24, %v948_v23  ;;  %v2460_v34 = vpack.c.bf16 %v961_v28, %v957_v27  ;;  %v960_v36 = vld [vmem:[#allocation9 + $0x5b0] sm:$0xff]  ;;  %v991_v20 = vld [vmem:[#allocation9 + $0x6a8] sm:$0xff]  ;;  %v2218_v23 = vpack.c.bf16 %v982_v12, %v978_v11  ;;  %v1010_v1 = vld [vmem:[#allocation9 + $0x740] sm:$0xff] }
 0x241   : > { %v2220_v27 = vpack.c.bf16 %v991_v20, %v987_v18  ;;  %v1014_v6 = vld [vmem:[#allocation9 + $0x760] sm:$0xff]  ;;  %v1019_v11 = vld [vmem:[#allocation9 + $0x788] sm:$0xff] }
 0x242   : > { %2187 = vmatpush1.bf16.msra.mxu0 %v2186_v39  ;;  %2443 = vmatpush1.bf16.msra.mxu1 %v2442_v40  ;;  %v963_v39 = vld [vmem:[#allocation9 + $0x5c8] sm:$0xff]  ;;  %v1018_v18 = vld [vmem:[#allocation9 + $0x780] sm:$0xff] }
 0x243   : > { %2189 = vmatprep.subr.bf16.mxu0 %v2188_v43  ;;  %2445 = vmatprep.subr.bf16.mxu1 %v2444_v44  ;;  %v967_v40 = vld [vmem:[#allocation9 + $0x5e8] sm:$0xff]  ;;  %v2206_v43 = vpack.c.bf16 %v958_v32, %v954_v31  ;;  %v2462_v44 = vpack.c.bf16 %v960_v36, %v956_v35  ;;  %v2222_v35 = vpack.c.bf16 %v990_v26, %v986_v25  ;;  %v1022_v20 = vld [vmem:[#allocation9 + $0x7a0] sm:$0xff] }
 0x244   : > { %v2208_v48 = vpack.c.bf16 %v967_v40, %v963_v39  ;;  %v995_v31 = vld [vmem:[#allocation9 + $0x6c8] sm:$0xff]  ;;  %v994_v39 = vld [vmem:[#allocation9 + $0x6c0] sm:$0xff] }
 0x245   : > { %v999_v32 = vld [vmem:[#allocation9 + $0x6e8] sm:$0xff]  ;;  %v998_v40 = vld [vmem:[#allocation9 + $0x6e0] sm:$0xff] }
 0x246   : > { %2191 = vmatpush1.bf16.msra.mxu0 %v2190_v51  ;;  %2447 = vmatpush1.bf16.msra.mxu1 %v2446_v52  ;;  %v968_v51 = vld [vmem:[#allocation9 + $0x5f0] sm:$0xff]  ;;  %v971_v52 = vld [vmem:[#allocation9 + $0x608] sm:$0xff]  ;;  %v2224_v41 = vpack.c.bf16 %v999_v32, %v995_v31  ;;  %v1026_v32 = vld [vmem:[#allocation9 + $0x7c0] sm:$0xff] }
 0x247   : > { %2193 = vmatprep.subr.bf16.mxu0 %v2192_v55  ;;  %2449 = vmatprep.subr.bf16.mxu1 %v2448_v56  ;;  %v973_v55 = vld [vmem:[#allocation9 + $0x618] sm:$0xff]  ;;  %v2466_v58 = vpack.c.bf16 %v968_v51, %v964_v50  ;;  %v2212_v61 = vpack.c.bf16 %v975_v54, %v971_v52  ;;  %v2226_v50 = vpack.c.bf16 %v998_v40, %v994_v39  ;;  %v1002_v52 = vld [vmem:[#allocation9 + $0x700] sm:$0xff]  ;;  %v1023_v12 = vld [vmem:[#allocation9 + $0x7a8] sm:$0xff] }
 0x248   : > { %v977_v56 = vld [vmem:[#allocation9 + $0x638] sm:$0xff]  ;;  %v1006_v54 = vld [vmem:[#allocation9 + $0x720] sm:$0xff]  ;;  %v1027_v25 = vld [vmem:[#allocation9 + $0x7c8] sm:$0xff] }
 0x249   : > { %v2468_v62 = vpack.c.bf16 %v977_v56, %v973_v55  ;;  %v2228_v55 = vpack.c.bf16 %v1007_v46, %v1003_v45  ;;  %v1031_v26 = vld [vmem:[#allocation9 + $0x7e8] sm:$0xff]  ;;  %v1032_v39 = vld [vmem:[#allocation9 + $0x7f0] sm:$0xff] }
 0x24a   : > { %2195 = vmatpush1.bf16.msra.mxu0 %v2194_v63  ;;  %2451 = vmatpush1.bf16.msra.mxu1 %v2450_v0  ;;  %v972_v63 = vld [vmem:[#allocation9 + $0x610] sm:$0xff]  ;;  %v1035_v40 = vld [vmem:[#allocation9 + $0x808] sm:$0xff] }
 0x24b   : > { %2197 = vmatprep.subr.bf16.mxu0 %v2196_v7  ;;  %2453 = vmatprep.subr.bf16.mxu1 %v2452_v8  ;;  %v976_v0 = vld [vmem:[#allocation9 + $0x630] sm:$0xff]  ;;  %v981_v7 = vld [vmem:[#allocation9 + $0x658] sm:$0xff] }
 0x24c   : > { %v985_v8 = vld [vmem:[#allocation9 + $0x678] sm:$0xff]  ;;  %v2470_v10 = vpack.c.bf16 %v976_v0, %v972_v63  ;;  %v2230_v63 = vpack.c.bf16 %v1006_v54, %v1002_v52  ;;  %v1036_v54 = vld [vmem:[#allocation9 + $0x810] sm:$0xff] }
 0x24d   : > { %v2472_v14 = vpack.c.bf16 %v985_v8, %v981_v7  ;;  %v2232_v7 = vpack.c.bf16 %v1015_v60, %v1011_v59  ;;  %v1049_v59 = vld [vmem:[#allocation9 + $0x878] sm:$0xff] }
 0x24e   : > { %2199 = vmatpush1.bf16.msra.mxu0 %v2198_v15  ;;  %2455 = vmatpush1.bf16.msra.mxu1 %v2454_v16  ;;  %v980_v15 = vld [vmem:[#allocation9 + $0x650] sm:$0xff] }
 0x24f   : > { %2201 = vmatprep.subr.bf16.mxu0 %v2200_v21  ;;  %2457 = vmatprep.subr.bf16.mxu1 %v2456_v22  ;;  %v984_v16 = vld [vmem:[#allocation9 + $0x670] sm:$0xff]  ;;  %v989_v21 = vld [vmem:[#allocation9 + $0x698] sm:$0xff] }
 0x250   : > { %v993_v22 = vld [vmem:[#allocation9 + $0x6b8] sm:$0xff]  ;;  %v2474_v24 = vpack.c.bf16 %v984_v16, %v980_v15  ;;  %v2234_v15 = vpack.c.bf16 %v1014_v6, %v1010_v1  ;;  %v1046_v1 = vld [vmem:[#allocation9 + $0x860] sm:$0xff] }
 0x251   : > { %v2476_v28 = vpack.c.bf16 %v993_v22, %v989_v21  ;;  %v2236_v21 = vpack.c.bf16 %v1023_v12, %v1019_v11  ;;  %v1055_v11 = vld [vmem:[#allocation9 + $0x8a8] sm:$0xff]  ;;  %v1053_v12 = vld [vmem:[#allocation9 + $0x898] sm:$0xff] }
 0x252   : > { %2203 = vmatpush1.bf16.msra.mxu0 %v2202_v29  ;;  %2459 = vmatpush1.bf16.msra.mxu1 %v2458_v30  ;;  %v988_v29 = vld [vmem:[#allocation9 + $0x690] sm:$0xff] }
 0x253   : > { %2205 = vmatprep.subr.bf16.mxu0 %v2204_v33  ;;  %2461 = vmatprep.subr.bf16.mxu1 %v2460_v34  ;;  %v992_v30 = vld [vmem:[#allocation9 + $0x6b0] sm:$0xff]  ;;  %v997_v33 = vld [vmem:[#allocation9 + $0x6d8] sm:$0xff] }
 0x254   : > { %v1001_v34 = vld [vmem:[#allocation9 + $0x6f8] sm:$0xff]  ;;  %v2478_v36 = vpack.c.bf16 %v992_v30, %v988_v29  ;;  %v437_v29 = vsub.s32 2, %v3252_v19  ;;  %v2238_v30 = vpack.c.bf16 %v1022_v20, %v1018_v18 }
 0x255   : > { %v2480_v42 = vpack.c.bf16 %v1001_v34, %v997_v33  ;;  %v1030_v33 = vld [vmem:[#allocation9 + $0x7e0] sm:$0xff]  ;;  %v2240_v34 = vpack.c.bf16 %v1031_v26, %v1027_v25  ;;  %v1061_v25 = vld [vmem:[#allocation9 + $0x8d8] sm:$0xff] }
 0x256   : > { %2207 = vmatpush1.bf16.msra.mxu0 %v2206_v43  ;;  %2463 = vmatpush1.bf16.msra.mxu1 %v2462_v44  ;;  %v996_v43 = vld [vmem:[#allocation9 + $0x6d0] sm:$0xff]  ;;  %v438_v45 = vrot.slane %v3270_v3, %v437_v29  ;;  %v2242_v46 = vpack.c.bf16 %v1030_v33, %v1026_v32  ;;  %v1065_v26 = vld [vmem:[#allocation9 + $0x8f8] sm:$0xff] }
 0x257   : > { %2209 = vmatprep.subr.bf16.mxu0 %v2208_v48  ;;  %2465 = vmatprep.subr.bf16.mxu1 %v2464_v49  ;;  %v1000_v44 = vld [vmem:[#allocation9 + $0x6f0] sm:$0xff]  ;;  %v1005_v48 = vld [vmem:[#allocation9 + $0x718] sm:$0xff]  ;;  %v2512_v32 = vpack.c.bf16 %v1065_v26, %v1061_v25 }
 0x258   : > { %v1009_v49 = vld [vmem:[#allocation9 + $0x738] sm:$0xff]  ;;  %v2482_v51 = vpack.c.bf16 %v1000_v44, %v996_v43  ;;  %v449_v44 = vsub.s32 5, %v3252_v19  ;;  %v1060_v33 = vld [vmem:[#allocation9 + $0x8d0] sm:$0xff] }
 0x259   : > { %v2484_v56 = vpack.c.bf16 %v1009_v49, %v1005_v48  ;;  %v1041_v43 = vld [vmem:[#allocation9 + $0x838] sm:$0xff]  ;;  %v1034_v49 = vld [vmem:[#allocation9 + $0x800] sm:$0xff]  ;;  %v1092_v25 = vld [vmem:[#allocation9 + $0x9d0] sm:$0xff] }
 0x25a   : > { %2211 = vmatpush1.bf16.msra.mxu0 %v2210_v57  ;;  %2467 = vmatpush1.bf16.msra.mxu1 %v2466_v58  ;;  %v1004_v57 = vld [vmem:[#allocation9 + $0x710] sm:$0xff]  ;;  %v450_v60 = vrot.slane %v3270_v3, %v449_v44  ;;  %v1070_v44 = vld [vmem:[#allocation9 + $0x920] sm:$0xff] }
 0x25b   : > { %2213 = vmatprep.subr.bf16.mxu0 %v2212_v61  ;;  %2469 = vmatprep.subr.bf16.mxu1 %v2468_v62  ;;  %v1008_v58 = vld [vmem:[#allocation9 + $0x730] sm:$0xff]  ;;  %v1013_v61 = vld [vmem:[#allocation9 + $0x758] sm:$0xff] }
 0x25c   : > { %v1017_v62 = vld [vmem:[#allocation9 + $0x778] sm:$0xff]  ;;  %v2486_v0 = vpack.c.bf16 %v1008_v58, %v1004_v57  ;;  %v1047_v57 = vld [vmem:[#allocation9 + $0x868] sm:$0xff]  ;;  %v705_v3 = vadd.f32 %v3287_v38, %v450_v60  ;;  %v1096_v26 = vld [vmem:[#allocation9 + $0x9f0] sm:$0xff] }
 0x25d   : > { %v2488_v8 = vpack.c.bf16 %v1017_v62, %v1013_v61  ;;  %v1045_v58 = vld [vmem:[#allocation9 + $0x858] sm:$0xff]  ;;  %v632_v61 = vadd.f32 %v3280_v17, %v438_v45 }
 0x25e   : > { %2215 = vmatpush1.bf16.msra.mxu0 %v2214_v9  ;;  %2471 = vmatpush1.bf16.msra.mxu1 %v2470_v10  ;;  %v1012_v9 = vld [vmem:[#allocation9 + $0x750] sm:$0xff] }
 0x25f   : > { %2217 = vmatprep.subr.bf16.mxu0 %v2216_v13  ;;  %2473 = vmatprep.subr.bf16.mxu1 %v2472_v14  ;;  %v1016_v10 = vld [vmem:[#allocation9 + $0x770] sm:$0xff]  ;;  %v1021_v13 = vld [vmem:[#allocation9 + $0x798] sm:$0xff] }
 0x260   : > { %v1025_v14 = vld [vmem:[#allocation9 + $0x7b8] sm:$0xff]  ;;  %v2490_v16 = vpack.c.bf16 %v1016_v10, %v1012_v9  ;;  %v1048_v9 = vld [vmem:[#allocation9 + $0x870] sm:$0xff]  ;;  %v1051_v10 = vld [vmem:[#allocation9 + $0x888] sm:$0xff] }
 0x261   : > { %v2492_v22 = vpack.c.bf16 %v1025_v14, %v1021_v13  ;;  %v1057_v13 = vld [vmem:[#allocation9 + $0x8b8] sm:$0xff]  ;;  %v2252_v18 = vpack.c.bf16 %v1055_v11, %v1051_v10  ;;  %v1086_v10 = vld [vmem:[#allocation9 + $0x9a0] sm:$0xff] }
 0x262   : > { %2219 = vmatpush1.bf16.msra.mxu0 %v2218_v23  ;;  %2475 = vmatpush1.bf16.msra.mxu1 %v2474_v24  ;;  %v1020_v23 = vld [vmem:[#allocation9 + $0x790] sm:$0xff]  ;;  %v2508_v20 = vpack.c.bf16 %v1057_v13, %v1053_v12 }
 0x263   : > { %2221 = vmatprep.subr.bf16.mxu0 %v2220_v27  ;;  %2477 = vmatprep.subr.bf16.mxu1 %v2476_v28  ;;  %v1024_v24 = vld [vmem:[#allocation9 + $0x7b0] sm:$0xff]  ;;  %v1029_v27 = vld [vmem:[#allocation9 + $0x7d8] sm:$0xff] }
 0x264   : > { %v1033_v28 = vld [vmem:[#allocation9 + $0x7f8] sm:$0xff]  ;;  %v2494_v31 = vpack.c.bf16 %v1024_v24, %v1020_v23  ;;  %v1059_v23 = vld [vmem:[#allocation9 + $0x8c8] sm:$0xff]  ;;  %v1084_v13 = vld [vmem:[#allocation9 + $0x990] sm:$0xff] }
 0x265   : > { %v1063_v24 = vld [vmem:[#allocation9 + $0x8e8] sm:$0xff] }
 0x266   : > { %2223 = vmatpush1.bf16.msra.mxu0 %v2222_v35  ;;  %2479 = vmatpush1.bf16.msra.mxu1 %v2478_v36  ;;  %v2496_v35 = vpack.c.bf16 %v1033_v28, %v1029_v27  ;;  %v1028_v36 = vld [vmem:[#allocation9 + $0x7d0] sm:$0xff]  ;;  %v1058_v28 = vld [vmem:[#allocation9 + $0x8c0] sm:$0xff] }
 0x267   : > { %2225 = vmatprep.subr.bf16.mxu0 %v2224_v41  ;;  %2481 = vmatprep.subr.bf16.mxu1 %v2480_v42  ;;  %v1039_v41 = vld [vmem:[#allocation9 + $0x828] sm:$0xff]  ;;  %v1037_v42 = vld [vmem:[#allocation9 + $0x818] sm:$0xff]  ;;  %v2498_v48 = vpack.c.bf16 %v1032_v39, %v1028_v36 }
 0x268   : > { %v2500_v52 = vpack.c.bf16 %v1041_v43, %v1037_v42  ;;  %v1071_v36 = vld [vmem:[#allocation9 + $0x928] sm:$0xff]  ;;  %v1069_v39 = vld [vmem:[#allocation9 + $0x918] sm:$0xff]  ;;  %v1066_v43 = vld [vmem:[#allocation9 + $0x900] sm:$0xff] }
 0x26a   : > { %2227 = vmatpush1.bf16.msra.mxu0 %v2226_v50  ;;  %2483 = vmatpush1.bf16.msra.mxu1 %v2482_v51  ;;  %v1038_v50 = vld [vmem:[#allocation9 + $0x820] sm:$0xff]  ;;  %v2244_v51 = vpack.c.bf16 %v1039_v41, %v1035_v40  ;;  %v1073_v40 = vld [vmem:[#allocation9 + $0x938] sm:$0xff] }
 0x26b   : > { %2229 = vmatprep.subr.bf16.mxu0 %v2228_v55  ;;  %2485 = vmatprep.subr.bf16.mxu1 %v2484_v56  ;;  %v1040_v55 = vld [vmem:[#allocation9 + $0x830] sm:$0xff]  ;;  %v1043_v56 = vld [vmem:[#allocation9 + $0x848] sm:$0xff]  ;;  %v2246_v62 = vpack.c.bf16 %v1038_v50, %v1034_v49 }
 0x26c   : > { %v2248_v6 = vpack.c.bf16 %v1047_v57, %v1043_v56  ;;  %v1072_v49 = vld [vmem:[#allocation9 + $0x930] sm:$0xff]  ;;  %v1075_v50 = vld [vmem:[#allocation9 + $0x948] sm:$0xff]  ;;  %v1074_v57 = vld [vmem:[#allocation9 + $0x940] sm:$0xff] }
 0x26e   : > { %2231 = vmatpush1.bf16.msra.mxu0 %v2230_v63  ;;  %2487 = vmatpush1.bf16.msra.mxu1 %v2486_v0  ;;  %v2502_v63 = vpack.c.bf16 %v1040_v55, %v1036_v54  ;;  %v1042_v0 = vld [vmem:[#allocation9 + $0x840] sm:$0xff]  ;;  %v1081_v54 = vld [vmem:[#allocation9 + $0x978] sm:$0xff]  ;;  %v2262_v55 = vpack.c.bf16 %v1070_v44, %v1066_v43 }
 0x26f   : > { %2233 = vmatprep.subr.bf16.mxu0 %v2232_v7  ;;  %2489 = vmatprep.subr.bf16.mxu1 %v2488_v8  ;;  %v2504_v7 = vpack.c.bf16 %v1049_v59, %v1045_v58  ;;  %v1044_v8 = vld [vmem:[#allocation9 + $0x850] sm:$0xff]  ;;  %v2250_v17 = vpack.c.bf16 %v1046_v1, %v1042_v0  ;;  %v1078_v58 = vld [vmem:[#allocation9 + $0x960] sm:$0xff]  ;;  %v1087_v0 = vld [vmem:[#allocation9 + $0x9a8] sm:$0xff] }
 0x270   : > { %v2506_v14 = vpack.c.bf16 %v1048_v9, %v1044_v8  ;;  %v1085_v1 = vld [vmem:[#allocation9 + $0x998] sm:$0xff]  ;;  %v1082_v9 = vld [vmem:[#allocation9 + $0x980] sm:$0xff] }
 0x271   : > { %v1109_v43 = vld [vmem:[#allocation9 + $0xa58] sm:$0xff] }
 0x272   : > { %2235 = vmatpush1.bf16.msra.mxu0 %v2234_v15  ;;  %2491 = vmatpush1.bf16.msra.mxu1 %v2490_v16  ;;  %v1050_v15 = vld [vmem:[#allocation9 + $0x880] sm:$0xff]  ;;  %v1113_v44 = vld [vmem:[#allocation9 + $0xa78] sm:$0xff] }
 0x273   : > { %2237 = vmatprep.subr.bf16.mxu0 %v2236_v21  ;;  %2493 = vmatprep.subr.bf16.mxu1 %v2492_v22  ;;  %v1054_v16 = vld [vmem:[#allocation9 + $0x8a0] sm:$0xff]  ;;  %v1052_v21 = vld [vmem:[#allocation9 + $0x890] sm:$0xff] }
 0x274   : > { %v1056_v22 = vld [vmem:[#allocation9 + $0x8b0] sm:$0xff]  ;;  %v2254_v38 = vpack.c.bf16 %v1054_v16, %v1050_v15  ;;  %v1093_v15 = vld [vmem:[#allocation9 + $0x9d8] sm:$0xff] }
 0x275   : > { %v2510_v27 = vpack.c.bf16 %v1056_v22, %v1052_v21  ;;  %v1097_v16 = vld [vmem:[#allocation9 + $0x9f8] sm:$0xff]  ;;  %v1090_v21 = vld [vmem:[#allocation9 + $0x9c0] sm:$0xff] }
 0x276   : > { %2239 = vmatpush1.bf16.msra.mxu0 %v2238_v30  ;;  %2495 = vmatpush1.bf16.msra.mxu1 %v2494_v31  ;;  %v1062_v30 = vld [vmem:[#allocation9 + $0x8e0] sm:$0xff]  ;;  %v2256_v31 = vpack.c.bf16 %v1063_v24, %v1059_v23  ;;  %v2528_v24 = vpack.c.bf16 %v1097_v16, %v1093_v15  ;;  %v1124_v15 = vld [vmem:[#allocation9 + $0xad0] sm:$0xff] }
 0x277   : > { %2241 = vmatprep.subr.bf16.mxu0 %v2240_v34  ;;  %2497 = vmatprep.subr.bf16.mxu1 %v2496_v35  ;;  %v1064_v34 = vld [vmem:[#allocation9 + $0x8f0] sm:$0xff]  ;;  %v1067_v35 = vld [vmem:[#allocation9 + $0x908] sm:$0xff]  ;;  %v2258_v41 = vpack.c.bf16 %v1062_v30, %v1058_v28  ;;  %v1094_v22 = vld [vmem:[#allocation9 + $0x9e0] sm:$0xff] }
 0x278   : > { %v2514_v42 = vpack.c.bf16 %v1064_v34, %v1060_v33  ;;  %v2260_v45 = vpack.c.bf16 %v1071_v36, %v1067_v35  ;;  %v1101_v28 = vld [vmem:[#allocation9 + $0xa18] sm:$0xff]  ;;  %v1098_v33 = vld [vmem:[#allocation9 + $0xa00] sm:$0xff]  ;;  %v1128_v16 = vld [vmem:[#allocation9 + $0xaf0] sm:$0xff] }
 0x279   : > { %v1105_v30 = vld [vmem:[#allocation9 + $0xa38] sm:$0xff]  ;;  %v1102_v34 = vld [vmem:[#allocation9 + $0xa20] sm:$0xff] }
 0x27a   : > { %2243 = vmatpush1.bf16.msra.mxu0 %v2242_v46  ;;  %2499 = vmatpush1.bf16.msra.mxu1 %v2498_v48  ;;  %v2516_v46 = vpack.c.bf16 %v1073_v40, %v1069_v39  ;;  %v1068_v48 = vld [vmem:[#allocation9 + $0x910] sm:$0xff]  ;;  %v2532_v36 = vpack.c.bf16 %v1105_v30, %v1101_v28 }
 0x27b   : > { %2245 = vmatprep.subr.bf16.mxu0 %v2244_v51  ;;  %2501 = vmatprep.subr.bf16.mxu1 %v2500_v52  ;;  %v1079_v51 = vld [vmem:[#allocation9 + $0x968] sm:$0xff]  ;;  %v1077_v52 = vld [vmem:[#allocation9 + $0x958] sm:$0xff]  ;;  %v2518_v56 = vpack.c.bf16 %v1072_v49, %v1068_v48  ;;  %v1100_v39 = vld [vmem:[#allocation9 + $0xa10] sm:$0xff] }
 0x27c   : > { %v2264_v59 = vpack.c.bf16 %v1079_v51, %v1075_v50  ;;  %v2520_v60 = vpack.c.bf16 %v1081_v54, %v1077_v52  ;;  %v1104_v40 = vld [vmem:[#allocation9 + $0xa30] sm:$0xff]  ;;  %v1106_v48 = vld [vmem:[#allocation9 + $0xa40] sm:$0xff]  ;;  %v2536_v51 = vpack.c.bf16 %v1113_v44, %v1109_v43 }
 0x27d   : > { %1448 = vmatmul.mubr.f32.vlgmr.msra.gmra.mrb[4].mxu0 %v632_v61  ;;  %1732 = vmatmul.mubr.f32.vlgmr.msra.gmra.mrb[4].mxu1 %v632_v61  ;;  %v1076_v61 = vld [vmem:[#allocation9 + $0x950] sm:$0xff]  ;;  %v1110_v49 = vld [vmem:[#allocation9 + $0xa60] sm:$0xff] }
 0x27e   : > { %2247 = vmatpush1.bf16.msra.mxu0 %v2246_v62  ;;  %2503 = vmatpush1.bf16.msra.mxu1 %v2502_v63  ;;  %v1080_v62 = vld [vmem:[#allocation9 + $0x970] sm:$0xff]  ;;  %v1083_v63 = vld [vmem:[#allocation9 + $0x988] sm:$0xff] }
 0x27f   : > { %2249 = vmatprep.subr.bf16.mxu0 %v2248_v6  ;;  %2505 = vmatprep.subr.bf16.mxu1 %v2504_v7  ;;  %v1089_v6 = vld [vmem:[#allocation9 + $0x9b8] sm:$0xff]  ;;  %v2266_v7 = vpack.c.bf16 %v1078_v58, %v1074_v57  ;;  %v2522_v8 = vpack.c.bf16 %v1080_v62, %v1076_v61  ;;  %v2268_v11 = vpack.c.bf16 %v1087_v0, %v1083_v63  ;;  %v1108_v52 = vld [vmem:[#allocation9 + $0xa50] sm:$0xff]  ;;  %v1114_v61 = vld [vmem:[#allocation9 + $0xa80] sm:$0xff] }
 0x280   : > { %1518 = vmatprep.mubr.f32.mxu0 %v705_v3  ;;  %1802 = vmatprep.mubr.f32.mxu1 %v705_v3  ;;  %v2524_v12 = vpack.c.bf16 %v1089_v6, %v1085_v1  ;;  %v1088_v3 = vld [vmem:[#allocation9 + $0x9b0] sm:$0xff]  ;;  %v1117_v57 = vld [vmem:[#allocation9 + $0xa98] sm:$0xff]  ;;  %v1118_v62 = vld [vmem:[#allocation9 + $0xaa0] sm:$0xff] }
 0x281   : > { %v1112_v54 = vld [vmem:[#allocation9 + $0xa70] sm:$0xff]  ;;  %v1121_v58 = vld [vmem:[#allocation9 + $0xab8] sm:$0xff] }
 0x282   : > { %2251 = vmatpush1.bf16.msra.mxu0 %v2250_v17  ;;  %2507 = vmatpush1.bf16.msra.mxu1 %v2506_v14  ;;  %v1091_v17 = vld [vmem:[#allocation9 + $0x9c8] sm:$0xff]  ;;  %v2540_v0 = vpack.c.bf16 %v1121_v58, %v1117_v57  ;;  %v1116_v1 = vld [vmem:[#allocation9 + $0xa90] sm:$0xff] }
 0x283   : > { %2253 = vmatprep.subr.bf16.mxu0 %v2252_v18  ;;  %2509 = vmatprep.subr.bf16.mxu1 %v2508_v20  ;;  %v1095_v14 = vld [vmem:[#allocation9 + $0x9e8] sm:$0xff]  ;;  %v2270_v18 = vpack.c.bf16 %v1086_v10, %v1082_v9  ;;  %v2526_v20 = vpack.c.bf16 %v1088_v3, %v1084_v13  ;;  %v1120_v6 = vld [vmem:[#allocation9 + $0xab0] sm:$0xff]  ;;  %v1125_v9 = vld [vmem:[#allocation9 + $0xad8] sm:$0xff] }
 0x284   : > { %v2272_v23 = vpack.c.bf16 %v1095_v14, %v1091_v17  ;;  %v1129_v10 = vld [vmem:[#allocation9 + $0xaf8] sm:$0xff]  ;;  %v1122_v13 = vld [vmem:[#allocation9 + $0xac0] sm:$0xff]  ;;  %v1132_v28 = vld [vmem:[#allocation9 + $0xb10] sm:$0xff] }
 0x285   : > { %v1126_v3 = vld [vmem:[#allocation9 + $0xae0] sm:$0xff]  ;;  %v2544_v14 = vpack.c.bf16 %v1129_v10, %v1125_v9  ;;  %v1136_v30 = vld [vmem:[#allocation9 + $0xb30] sm:$0xff] }
 0x286   : > { %2255 = vmatpush1.bf16.msra.mxu0 %v2254_v38  ;;  %2511 = vmatpush1.bf16.msra.mxu1 %v2510_v27  ;;  %v1099_v38 = vld [vmem:[#allocation9 + $0xa08] sm:$0xff]  ;;  %v1140_v43 = vld [vmem:[#allocation9 + $0xb50] sm:$0xff] }
 0x287   : > { %2257 = vmatprep.subr.bf16.mxu0 %v2256_v31  ;;  %2513 = vmatprep.subr.bf16.mxu1 %v2512_v32  ;;  %v1103_v27 = vld [vmem:[#allocation9 + $0xa28] sm:$0xff]  ;;  %v2274_v31 = vpack.c.bf16 %v1094_v22, %v1090_v21  ;;  %v2530_v32 = vpack.c.bf16 %v1096_v26, %v1092_v25  ;;  %v1133_v21 = vld [vmem:[#allocation9 + $0xb18] sm:$0xff]  ;;  %v1130_v25 = vld [vmem:[#allocation9 + $0xb00] sm:$0xff] }
 0x288   : > { %v2276_v35 = vpack.c.bf16 %v1103_v27, %v1099_v38  ;;  %v1137_v22 = vld [vmem:[#allocation9 + $0xb38] sm:$0xff]  ;;  %v1134_v26 = vld [vmem:[#allocation9 + $0xb20] sm:$0xff]  ;;  %v1144_v44 = vld [vmem:[#allocation9 + $0xb70] sm:$0xff] }
 0x289   : > { %v2548_v27 = vpack.c.bf16 %v1137_v22, %v1133_v21  ;;  %v1148_v57 = vld [vmem:[#allocation9 + $0xb90] sm:$0xff]  ;;  %v1162_v21 = vld [vmem:[#allocation9 + $0xc00] sm:$0xff] }
 0x28a   : > { %2259 = vmatpush1.bf16.msra.mxu0 %v2258_v41  ;;  %2515 = vmatpush1.bf16.msra.mxu1 %v2514_v42  ;;  %v1107_v41 = vld [vmem:[#allocation9 + $0xa48] sm:$0xff]  ;;  %v1152_v58 = vld [vmem:[#allocation9 + $0xbb0] sm:$0xff]  ;;  %v1166_v22 = vld [vmem:[#allocation9 + $0xc20] sm:$0xff] }
 0x28b   : > { %2261 = vmatprep.subr.bf16.mxu0 %v2260_v45  ;;  %2517 = vmatprep.subr.bf16.mxu1 %v2516_v46  ;;  %v1111_v42 = vld [vmem:[#allocation9 + $0xa68] sm:$0xff]  ;;  %v2278_v45 = vpack.c.bf16 %v1102_v34, %v1098_v33  ;;  %v2534_v46 = vpack.c.bf16 %v1104_v40, %v1100_v39  ;;  %v1141_v33 = vld [vmem:[#allocation9 + $0xb58] sm:$0xff]  ;;  %v1138_v39 = vld [vmem:[#allocation9 + $0xb40] sm:$0xff] }
 0x28c   : > { %v2280_v50 = vpack.c.bf16 %v1111_v42, %v1107_v41  ;;  %v1145_v34 = vld [vmem:[#allocation9 + $0xb78] sm:$0xff]  ;;  %v1142_v40 = vld [vmem:[#allocation9 + $0xb60] sm:$0xff]  ;;  %v1156_v10 = vld [vmem:[#allocation9 + $0xbd0] sm:$0xff] }
 0x28d   : > { %v2552_v42 = vpack.c.bf16 %v1145_v34, %v1141_v33  ;;  %v2310_v33 = vpack.c.bf16 %v1166_v22, %v1162_v21  ;;  %v1203_v21 = vld [vmem:[#allocation9 + $0xd48] sm:$0xff] }
 0x28e   : > { %2263 = vmatpush1.bf16.msra.mxu0 %v2262_v55  ;;  %2519 = vmatpush1.bf16.msra.mxu1 %v2518_v56  ;;  %v1115_v55 = vld [vmem:[#allocation9 + $0xa88] sm:$0xff] }
 0x28f   : > { %2265 = vmatprep.subr.bf16.mxu0 %v2264_v59  ;;  %2521 = vmatprep.subr.bf16.mxu1 %v2520_v60  ;;  %v1119_v56 = vld [vmem:[#allocation9 + $0xaa8] sm:$0xff]  ;;  %v2282_v59 = vpack.c.bf16 %v1110_v49, %v1106_v48  ;;  %v2538_v60 = vpack.c.bf16 %v1112_v54, %v1108_v52  ;;  %v1149_v48 = vld [vmem:[#allocation9 + $0xb98] sm:$0xff]  ;;  %v1146_v52 = vld [vmem:[#allocation9 + $0xb80] sm:$0xff] }
 0x290   : > { %v2284_v63 = vpack.c.bf16 %v1119_v56, %v1115_v55  ;;  %v1153_v49 = vld [vmem:[#allocation9 + $0xbb8] sm:$0xff]  ;;  %v1150_v54 = vld [vmem:[#allocation9 + $0xba0] sm:$0xff]  ;;  %v1207_v22 = vld [vmem:[#allocation9 + $0xd68] sm:$0xff] }
 0x291   : > { %v2556_v56 = vpack.c.bf16 %v1153_v49, %v1149_v48 }
 0x292   : > { %2267 = vmatpush1.bf16.msra.mxu0 %v2266_v7  ;;  %2523 = vmatpush1.bf16.msra.mxu1 %v2522_v8  ;;  %v1123_v7 = vld [vmem:[#allocation9 + $0xac8] sm:$0xff] }
 0x293   : > { %2269 = vmatprep.subr.bf16.mxu0 %v2268_v11  ;;  %2525 = vmatprep.subr.bf16.mxu1 %v2524_v12  ;;  %v1127_v8 = vld [vmem:[#allocation9 + $0xae8] sm:$0xff]  ;;  %v2286_v11 = vpack.c.bf16 %v1118_v62, %v1114_v61  ;;  %v2542_v12 = vpack.c.bf16 %v1120_v6, %v1116_v1  ;;  %v1157_v61 = vld [vmem:[#allocation9 + $0xbd8] sm:$0xff]  ;;  %v2558_v1 = vpack.c.bf16 %v1152_v58, %v1148_v57  ;;  %v1154_v6 = vld [vmem:[#allocation9 + $0xbc0] sm:$0xff] }
 0x294   : > { %v2288_v17 = vpack.c.bf16 %v1127_v8, %v1123_v7  ;;  %v1161_v62 = vld [vmem:[#allocation9 + $0xbf8] sm:$0xff]  ;;  %v1158_v7 = vld [vmem:[#allocation9 + $0xbe0] sm:$0xff]  ;;  %v1187_v57 = vld [vmem:[#allocation9 + $0xcc8] sm:$0xff] }
 0x295   : > { %v2560_v9 = vpack.c.bf16 %v1161_v62, %v1157_v61  ;;  %v1191_v58 = vld [vmem:[#allocation9 + $0xce8] sm:$0xff]  ;;  %v1186_v62 = vld [vmem:[#allocation9 + $0xcc0] sm:$0xff] }
 0x296   : > { %2271 = vmatpush1.bf16.msra.mxu0 %v2270_v18  ;;  %2527 = vmatpush1.bf16.msra.mxu1 %v2526_v20  ;;  %v1131_v18 = vld [vmem:[#allocation9 + $0xb08] sm:$0xff] }
 0x297   : > { %2273 = vmatprep.subr.bf16.mxu0 %v2272_v23  ;;  %2529 = vmatprep.subr.bf16.mxu1 %v2528_v24  ;;  %v1135_v20 = vld [vmem:[#allocation9 + $0xb28] sm:$0xff]  ;;  %v2290_v23 = vpack.c.bf16 %v1126_v3, %v1122_v13  ;;  %v2546_v24 = vpack.c.bf16 %v1128_v16, %v1124_v15  ;;  %v1165_v3 = vld [vmem:[#allocation9 + $0xc18] sm:$0xff] }
 0x298   : > { %v2292_v38 = vpack.c.bf16 %v1135_v20, %v1131_v18  ;;  %v1167_v13 = vld [vmem:[#allocation9 + $0xc28] sm:$0xff]  ;;  %v3303_v15 = vld [vmem:[#allocation8] sm:$0xff]  ;;  %v2306_v18 = vpack.c.bf16 %v1158_v7, %v1154_v6  ;;  %v1188_v6 = vld [vmem:[#allocation9 + $0xcd0] sm:$0xff] }
 0x299   : > { %v1192_v7 = vld [vmem:[#allocation9 + $0xcf0] sm:$0xff] }
 0x29a   : > { %2275 = vmatpush1.bf16.msra.mxu0 %v2274_v31  ;;  %2531 = vmatpush1.bf16.msra.mxu1 %v2530_v32  ;;  %v1139_v31 = vld [vmem:[#allocation9 + $0xb48] sm:$0xff] }
 0x29b   : > { %2277 = vmatprep.subr.bf16.mxu0 %v2276_v35  ;;  %2533 = vmatprep.subr.bf16.mxu1 %v2532_v36  ;;  %v1143_v32 = vld [vmem:[#allocation9 + $0xb68] sm:$0xff]  ;;  %v2294_v35 = vpack.c.bf16 %v1134_v26, %v1130_v25  ;;  %v2550_v36 = vpack.c.bf16 %v1136_v30, %v1132_v28  ;;  %v1164_v25 = vld [vmem:[#allocation9 + $0xc10] sm:$0xff]  ;;  %v1173_v28 = vld [vmem:[#allocation9 + $0xc58] sm:$0xff] }
 0x29c   : > { %v2296_v41 = vpack.c.bf16 %v1143_v32, %v1139_v31  ;;  %v1168_v26 = vld [vmem:[#allocation9 + $0xc30] sm:$0xff]  ;;  %v1177_v30 = vld [vmem:[#allocation9 + $0xc78] sm:$0xff] }
 0x29d   : > { %v2566_v34 = vpack.c.bf16 %v1168_v26, %v1164_v25 }
 0x29e   : > { %2279 = vmatpush1.bf16.msra.mxu0 %v2278_v45  ;;  %2535 = vmatpush1.bf16.msra.mxu1 %v2534_v46  ;;  %v1147_v45 = vld [vmem:[#allocation9 + $0xb88] sm:$0xff] }
 0x29f   : > { %2281 = vmatprep.subr.bf16.mxu0 %v2280_v50  ;;  %2537 = vmatprep.subr.bf16.mxu1 %v2536_v51  ;;  %v1151_v46 = vld [vmem:[#allocation9 + $0xba8] sm:$0xff]  ;;  %v2298_v50 = vpack.c.bf16 %v1142_v40, %v1138_v39  ;;  %v2554_v51 = vpack.c.bf16 %v1144_v44, %v1140_v43  ;;  %v2568_v40 = vpack.c.bf16 %v1177_v30, %v1173_v28 }
 0x2a0   : > { %v2300_v55 = vpack.c.bf16 %v1151_v46, %v1147_v45  ;;  %v1179_v43 = vld [vmem:[#allocation9 + $0xc88] sm:$0xff]  ;;  %v1181_v45 = vld [vmem:[#allocation9 + $0xc98] sm:$0xff]  ;;  %v2328_v28 = vpack.c.bf16 %v1207_v22, %v1203_v21  ;;  %v1236_v22 = vld [vmem:[#allocation9 + $0xe50] sm:$0xff] }
 0x2a1   : > { %v1183_v44 = vld [vmem:[#allocation9 + $0xca8] sm:$0xff]  ;;  %v1185_v46 = vld [vmem:[#allocation9 + $0xcb8] sm:$0xff] }
 0x2a2   : > { %2283 = vmatpush1.bf16.msra.mxu0 %v2282_v59  ;;  %2539 = vmatpush1.bf16.msra.mxu1 %v2538_v60  ;;  %v1155_v59 = vld [vmem:[#allocation9 + $0xbc8] sm:$0xff] }
 0x2a3   : > { %2285 = vmatprep.subr.bf16.mxu0 %v2284_v63  ;;  %2541 = vmatprep.subr.bf16.mxu1 %v2540_v0  ;;  %v1159_v60 = vld [vmem:[#allocation9 + $0xbe8] sm:$0xff]  ;;  %v445_v63 = vsub.s32 4, %v3252_v19  ;;  %v2302_v0 = vpack.c.bf16 %v1150_v54, %v1146_v52  ;;  %v2316_v52 = vpack.c.bf16 %v1183_v44, %v1179_v43  ;;  %v2572_v54 = vpack.c.bf16 %v1185_v46, %v1181_v45  ;;  %v1212_v45 = vld [vmem:[#allocation9 + $0xd90] sm:$0xff] }
 0x2a4   : > { %v2304_v8 = vpack.c.bf16 %v1159_v60, %v1155_v59  ;;  %v1189_v59 = vld [vmem:[#allocation9 + $0xcd8] sm:$0xff]  ;;  %v1216_v46 = vld [vmem:[#allocation9 + $0xdb0] sm:$0xff] }
 0x2a5   : > { %v446_v16 = vrot.slane %v3303_v15, %v445_v63  ;;  %v1193_v60 = vld [vmem:[#allocation9 + $0xcf8] sm:$0xff]  ;;  %v1190_v63 = vld [vmem:[#allocation9 + $0xce0] sm:$0xff] }
 0x2a6   : > { %2287 = vmatpush1.bf16.msra.mxu0 %v2286_v11  ;;  %2543 = vmatpush1.bf16.msra.mxu1 %v2542_v12  ;;  %v1160_v11 = vld [vmem:[#allocation9 + $0xbf0] sm:$0xff]  ;;  %v1163_v12 = vld [vmem:[#allocation9 + $0xc08] sm:$0xff] }
 0x2a7   : > { %2289 = vmatprep.subr.bf16.mxu0 %v2288_v17  ;;  %2545 = vmatprep.subr.bf16.mxu1 %v2544_v14  ;;  %v1169_v17 = vld [vmem:[#allocation9 + $0xc38] sm:$0xff]  ;;  %v457_v14 = vsub.s32 7, %v3252_v19  ;;  %v2562_v20 = vpack.c.bf16 %v1160_v11, %v1156_v10  ;;  %v703_v32 = vadd.f32 %v3285_v37, %v446_v16 }
 0x2a8   : > { %v1197_v10 = vld [vmem:[#allocation9 + $0xd18] sm:$0xff] }
 0x2a9   : > { %v458_v31 = vrot.slane %v3303_v15, %v457_v14  ;;  %v1201_v11 = vld [vmem:[#allocation9 + $0xd38] sm:$0xff] }
 0x2aa   : > { %2291 = vmatpush1.bf16.msra.mxu0 %v2290_v23  ;;  %2547 = vmatpush1.bf16.msra.mxu1 %v2546_v24  ;;  %v2308_v23 = vpack.c.bf16 %v1167_v13, %v1163_v12  ;;  %v2564_v24 = vpack.c.bf16 %v1169_v17, %v1165_v3  ;;  %v2322_v12 = vpack.c.bf16 %v1190_v63, %v1186_v62  ;;  %v1194_v3 = vld [vmem:[#allocation9 + $0xd00] sm:$0xff]  ;;  %v1233_v62 = vld [vmem:[#allocation9 + $0xe38] sm:$0xff] }
 0x2ab   : > { %2293 = vmatprep.subr.bf16.mxu0 %v2292_v38  ;;  %2549 = vmatprep.subr.bf16.mxu1 %v2548_v27  ;;  %v1171_v38 = vld [vmem:[#allocation9 + $0xc48] sm:$0xff]  ;;  %v776_v48 = vadd.f32 %v3291_v53, %v458_v31  ;;  %v2578_v13 = vpack.c.bf16 %v1192_v7, %v1188_v6  ;;  %v1198_v17 = vld [vmem:[#allocation9 + $0xd20] sm:$0xff]  ;;  %v2580_v16 = vpack.c.bf16 %v1201_v11, %v1197_v10  ;;  %v1204_v31 = vld [vmem:[#allocation9 + $0xd50] sm:$0xff] }
 0x2ac   : > { %v1175_v27 = vld [vmem:[#allocation9 + $0xc68] sm:$0xff]  ;;  %v2326_v25 = vpack.c.bf16 %v1198_v17, %v1194_v3  ;;  %v1230_v6 = vld [vmem:[#allocation9 + $0xe20] sm:$0xff]  ;;  %v1232_v10 = vld [vmem:[#allocation9 + $0xe30] sm:$0xff] }
 0x2ad   : > { %v2312_v39 = vpack.c.bf16 %v1175_v27, %v1171_v38  ;;  %v1202_v38 = vld [vmem:[#allocation9 + $0xd40] sm:$0xff]  ;;  %v1235_v11 = vld [vmem:[#allocation9 + $0xe48] sm:$0xff]  ;;  %v1241_v3 = vld [vmem:[#allocation9 + $0xe78] sm:$0xff] }
 0x2ae   : > { %2295 = vmatpush1.bf16.msra.mxu0 %v2294_v35  ;;  %2551 = vmatpush1.bf16.msra.mxu1 %v2550_v36  ;;  %v1170_v35 = vld [vmem:[#allocation9 + $0xc40] sm:$0xff] }
 0x2af   : > { %2297 = vmatprep.subr.bf16.mxu0 %v2296_v41  ;;  %2553 = vmatprep.subr.bf16.mxu1 %v2552_v42  ;;  %v1174_v36 = vld [vmem:[#allocation9 + $0xc60] sm:$0xff]  ;;  %v1172_v41 = vld [vmem:[#allocation9 + $0xc50] sm:$0xff] }
 0x2b0   : > { %v1176_v42 = vld [vmem:[#allocation9 + $0xc70] sm:$0xff]  ;;  %v2314_v37 = vpack.c.bf16 %v1174_v36, %v1170_v35  ;;  %v1206_v27 = vld [vmem:[#allocation9 + $0xd60] sm:$0xff]  ;;  %v1213_v35 = vld [vmem:[#allocation9 + $0xd98] sm:$0xff] }
 0x2b1   : > { %v2570_v49 = vpack.c.bf16 %v1176_v42, %v1172_v41  ;;  %v1217_v36 = vld [vmem:[#allocation9 + $0xdb8] sm:$0xff]  ;;  %v1210_v41 = vld [vmem:[#allocation9 + $0xd80] sm:$0xff] }
 0x2b2   : > { %2299 = vmatpush1.bf16.msra.mxu0 %v2298_v50  ;;  %2555 = vmatpush1.bf16.msra.mxu1 %v2554_v51  ;;  %v1178_v50 = vld [vmem:[#allocation9 + $0xc80] sm:$0xff]  ;;  %v2588_v44 = vpack.c.bf16 %v1217_v36, %v1213_v35  ;;  %v1248_v35 = vld [vmem:[#allocation9 + $0xeb0] sm:$0xff]  ;;  %v1251_v36 = vld [vmem:[#allocation9 + $0xec8] sm:$0xff] }
 0x2b3   : > { %2301 = vmatprep.subr.bf16.mxu0 %v2300_v55  ;;  %2557 = vmatprep.subr.bf16.mxu1 %v2556_v56  ;;  %v1182_v51 = vld [vmem:[#allocation9 + $0xca0] sm:$0xff]  ;;  %v1180_v55 = vld [vmem:[#allocation9 + $0xc90] sm:$0xff] }
 0x2b4   : > { %v1184_v56 = vld [vmem:[#allocation9 + $0xcb0] sm:$0xff]  ;;  %v2318_v53 = vpack.c.bf16 %v1182_v51, %v1178_v50  ;;  %v1214_v42 = vld [vmem:[#allocation9 + $0xda0] sm:$0xff]  ;;  %v1225_v50 = vld [vmem:[#allocation9 + $0xdf8] sm:$0xff] }
 0x2b5   : > { %v2574_v61 = vpack.c.bf16 %v1184_v56, %v1180_v55  ;;  %v2334_v51 = vpack.c.bf16 %v1214_v42, %v1210_v41  ;;  %v1222_v55 = vld [vmem:[#allocation9 + $0xde0] sm:$0xff]  ;;  %v1257_v41 = vld [vmem:[#allocation9 + $0xef8] sm:$0xff] }
 0x2b6   : > { %2303 = vmatpush1.bf16.msra.mxu0 %v2302_v0  ;;  %2559 = vmatpush1.bf16.msra.mxu1 %v2558_v1  ;;  %v2320_v0 = vpack.c.bf16 %v1191_v58, %v1187_v57  ;;  %v2576_v1 = vpack.c.bf16 %v1193_v60, %v1189_v59  ;;  %v1220_v58 = vld [vmem:[#allocation9 + $0xdd0] sm:$0xff]  ;;  %v1227_v60 = vld [vmem:[#allocation9 + $0xe08] sm:$0xff] }
 0x2b7   : > { %2305 = vmatprep.subr.bf16.mxu0 %v2304_v8  ;;  %2561 = vmatprep.subr.bf16.mxu1 %v2560_v9  ;;  %v1195_v8 = vld [vmem:[#allocation9 + $0xd08] sm:$0xff]  ;;  %v1224_v59 = vld [vmem:[#allocation9 + $0xdf0] sm:$0xff] }
 0x2b8   : > { %v1199_v9 = vld [vmem:[#allocation9 + $0xd28] sm:$0xff] }
 0x2b9   : > { %v2324_v14 = vpack.c.bf16 %v1199_v9, %v1195_v8  ;;  %v1228_v9 = vld [vmem:[#allocation9 + $0xe10] sm:$0xff] }
 0x2ba   : > { %2307 = vmatpush1.bf16.msra.mxu0 %v2306_v18  ;;  %2563 = vmatpush1.bf16.msra.mxu1 %v2562_v20  ;;  %v1196_v18 = vld [vmem:[#allocation9 + $0xd10] sm:$0xff] }
 0x2bb   : > { %2309 = vmatprep.subr.bf16.mxu0 %v2308_v23  ;;  %2565 = vmatprep.subr.bf16.mxu1 %v2564_v24  ;;  %v1200_v20 = vld [vmem:[#allocation9 + $0xd30] sm:$0xff]  ;;  %v1205_v23 = vld [vmem:[#allocation9 + $0xd58] sm:$0xff] }
 0x2bc   : > { %v1209_v24 = vld [vmem:[#allocation9 + $0xd78] sm:$0xff]  ;;  %v2582_v26 = vpack.c.bf16 %v1200_v20, %v1196_v18  ;;  %v1238_v18 = vld [vmem:[#allocation9 + $0xe60] sm:$0xff] }
 0x2bd   : > { %1519 = vmatmul.mubr.f32.vlgmr.msra.gmra.mrb[4].mxu0 %v703_v32  ;;  %1803 = vmatmul.mubr.f32.vlgmr.msra.gmra.mrb[4].mxu1 %v703_v32  ;;  %v2584_v30 = vpack.c.bf16 %v1209_v24, %v1205_v23  ;;  %v1208_v32 = vld [vmem:[#allocation9 + $0xd70] sm:$0xff]  ;;  %v1243_v24 = vld [vmem:[#allocation9 + $0xe88] sm:$0xff] }
 0x2be   : > { %2311 = vmatpush1.bf16.msra.mxu0 %v2310_v33  ;;  %2567 = vmatpush1.bf16.msra.mxu1 %v2566_v34  ;;  %v1211_v33 = vld [vmem:[#allocation9 + $0xd88] sm:$0xff]  ;;  %v1240_v23 = vld [vmem:[#allocation9 + $0xe70] sm:$0xff] }
 0x2bf   : > { %2313 = vmatprep.subr.bf16.mxu0 %v2312_v39  ;;  %2569 = vmatprep.subr.bf16.mxu1 %v2568_v40  ;;  %v1215_v34 = vld [vmem:[#allocation9 + $0xda8] sm:$0xff]  ;;  %v2330_v39 = vpack.c.bf16 %v1206_v27, %v1202_v38  ;;  %v2586_v40 = vpack.c.bf16 %v1208_v32, %v1204_v31  ;;  %v1249_v38 = vld [vmem:[#allocation9 + $0xeb8] sm:$0xff]  ;;  %v1246_v31 = vld [vmem:[#allocation9 + $0xea0] sm:$0xff] }
 0x2c0   : > { %1589 = vmatprep.mubr.f32.mxu0 %v776_v48  ;;  %1873 = vmatprep.mubr.f32.mxu1 %v776_v48  ;;  %v2332_v43 = vpack.c.bf16 %v1215_v34, %v1211_v33  ;;  %v1219_v48 = vld [vmem:[#allocation9 + $0xdc8] sm:$0xff]  ;;  %v1244_v34 = vld [vmem:[#allocation9 + $0xe90] sm:$0xff] }
 0x2c2   : > { %2315 = vmatpush1.bf16.msra.mxu0 %v2314_v37  ;;  %2571 = vmatpush1.bf16.msra.mxu1 %v2570_v49  ;;  %v1223_v37 = vld [vmem:[#allocation9 + $0xde8] sm:$0xff]  ;;  %v1221_v49 = vld [vmem:[#allocation9 + $0xdd8] sm:$0xff] }
 0x2c3   : > { %2317 = vmatprep.subr.bf16.mxu0 %v2316_v52  ;;  %2573 = vmatprep.subr.bf16.mxu1 %v2572_v54  ;;  %v2590_v52 = vpack.c.bf16 %v1216_v46, %v1212_v45  ;;  %v1218_v54 = vld [vmem:[#allocation9 + $0xdc0] sm:$0xff]  ;;  %v2336_v56 = vpack.c.bf16 %v1223_v37, %v1219_v48  ;;  %v2592_v57 = vpack.c.bf16 %v1225_v50, %v1221_v49  ;;  %v1252_v37 = vld [vmem:[#allocation9 + $0xed0] sm:$0xff]  ;;  %v1259_v50 = vld [vmem:[#allocation9 + $0xf08] sm:$0xff] }
 0x2c4   : > { %v2338_v63 = vpack.c.bf16 %v1222_v55, %v1218_v54  ;;  %v1254_v45 = vld [vmem:[#allocation9 + $0xee0] sm:$0xff]  ;;  %v1256_v49 = vld [vmem:[#allocation9 + $0xef0] sm:$0xff]  ;;  %v1265_v54 = vld [vmem:[#allocation9 + $0xf38] sm:$0xff] }
 0x2c6   : > { %2319 = vmatpush1.bf16.msra.mxu0 %v2318_v53  ;;  %2575 = vmatpush1.bf16.msra.mxu1 %v2574_v61  ;;  %v1231_v53 = vld [vmem:[#allocation9 + $0xe28] sm:$0xff]  ;;  %v1229_v61 = vld [vmem:[#allocation9 + $0xe18] sm:$0xff] }
 0x2c7   : > { %2321 = vmatprep.subr.bf16.mxu0 %v2320_v0  ;;  %2577 = vmatprep.subr.bf16.mxu1 %v2576_v1  ;;  %v2594_v0 = vpack.c.bf16 %v1224_v59, %v1220_v58  ;;  %v1226_v1 = vld [vmem:[#allocation9 + $0xe00] sm:$0xff]  ;;  %v2340_v7 = vpack.c.bf16 %v1231_v53, %v1227_v60  ;;  %v2596_v8 = vpack.c.bf16 %v1233_v62, %v1229_v61  ;;  %v1260_v53 = vld [vmem:[#allocation9 + $0xf10] sm:$0xff]  ;;  %v1267_v62 = vld [vmem:[#allocation9 + $0xf48] sm:$0xff] }
 0x2c8   : > { %v2342_v17 = vpack.c.bf16 %v1230_v6, %v1226_v1  ;;  %v1262_v58 = vld [vmem:[#allocation9 + $0xf20] sm:$0xff]  ;;  %v1264_v61 = vld [vmem:[#allocation9 + $0xf30] sm:$0xff]  ;;  %v1273_v1 = vld [vmem:[#allocation9 + $0xf78] sm:$0xff] }
 0x2ca   : > { %2323 = vmatpush1.bf16.msra.mxu0 %v2322_v12  ;;  %2579 = vmatpush1.bf16.msra.mxu1 %v2578_v13  ;;  %v1239_v12 = vld [vmem:[#allocation9 + $0xe68] sm:$0xff]  ;;  %v1237_v13 = vld [vmem:[#allocation9 + $0xe58] sm:$0xff] }
 0x2cb   : > { %2325 = vmatprep.subr.bf16.mxu0 %v2324_v14  ;;  %2581 = vmatprep.subr.bf16.mxu1 %v2580_v16  ;;  %v2598_v14 = vpack.c.bf16 %v1232_v10, %v1228_v9  ;;  %v1234_v16 = vld [vmem:[#allocation9 + $0xe40] sm:$0xff]  ;;  %v2344_v20 = vpack.c.bf16 %v1239_v12, %v1235_v11  ;;  %v2600_v21 = vpack.c.bf16 %v1241_v3, %v1237_v13  ;;  %v1268_v12 = vld [vmem:[#allocation9 + $0xf50] sm:$0xff]  ;;  %v1275_v3 = vld [vmem:[#allocation9 + $0xf88] sm:$0xff] }
 0x2cc   : > { %v2346_v27 = vpack.c.bf16 %v1238_v18, %v1234_v16  ;;  %v1270_v9 = vld [vmem:[#allocation9 + $0xf60] sm:$0xff]  ;;  %v1272_v13 = vld [vmem:[#allocation9 + $0xf70] sm:$0xff]  ;;  %v1281_v16 = vld [vmem:[#allocation9 + $0xfb8] sm:$0xff] }
 0x2ce   : > { %2327 = vmatpush1.bf16.msra.mxu0 %v2326_v25  ;;  %2583 = vmatpush1.bf16.msra.mxu1 %v2582_v26  ;;  %v1247_v25 = vld [vmem:[#allocation9 + $0xea8] sm:$0xff]  ;;  %v1245_v26 = vld [vmem:[#allocation9 + $0xe98] sm:$0xff] }
 0x2cf   : > { %2329 = vmatprep.subr.bf16.mxu0 %v2328_v28  ;;  %2585 = vmatprep.subr.bf16.mxu1 %v2584_v30  ;;  %v2602_v28 = vpack.c.bf16 %v1240_v23, %v1236_v22  ;;  %v1242_v30 = vld [vmem:[#allocation9 + $0xe80] sm:$0xff]  ;;  %v2348_v32 = vpack.c.bf16 %v1247_v25, %v1243_v24  ;;  %v2604_v33 = vpack.c.bf16 %v1249_v38, %v1245_v26  ;;  %v1276_v25 = vld [vmem:[#allocation9 + $0xf90] sm:$0xff]  ;;  %v1283_v38 = vld [vmem:[#allocation9 + $0xfc8] sm:$0xff] }
 0x2d0   : > { %v2350_v42 = vpack.c.bf16 %v1246_v31, %v1242_v30  ;;  %v1278_v22 = vld [vmem:[#allocation9 + $0xfa0] sm:$0xff]  ;;  %v1280_v26 = vld [vmem:[#allocation9 + $0xfb0] sm:$0xff]  ;;  %v1289_v30 = vld [vmem:[#allocation9 + $0xff8] sm:$0xff] }
 0x2d2   : > { %2331 = vmatpush1.bf16.msra.mxu0 %v2330_v39  ;;  %2587 = vmatpush1.bf16.msra.mxu1 %v2586_v40  ;;  %v1255_v39 = vld [vmem:[#allocation9 + $0xee8] sm:$0xff]  ;;  %v1253_v40 = vld [vmem:[#allocation9 + $0xed8] sm:$0xff] }
 0x2d3   : > { %2333 = vmatprep.subr.bf16.mxu0 %v2332_v43  ;;  %2589 = vmatprep.subr.bf16.mxu1 %v2588_v44  ;;  %v2606_v43 = vpack.c.bf16 %v1248_v35, %v1244_v34  ;;  %v1250_v44 = vld [vmem:[#allocation9 + $0xec0] sm:$0xff]  ;;  %v2352_v46 = vpack.c.bf16 %v1255_v39, %v1251_v36  ;;  %v2608_v48 = vpack.c.bf16 %v1257_v41, %v1253_v40  ;;  %v453_v34 = vsub.s32 6, %v3252_v19  ;;  %v1284_v40 = vld [vmem:[#allocation9 + $0xfd0] sm:$0xff] }
 0x2d4   : > { %v2354_v55 = vpack.c.bf16 %v1254_v45, %v1250_v44  ;;  %v1286_v39 = vld [vmem:[#allocation9 + $0xfe0] sm:$0xff]  ;;  %v1288_v41 = vld [vmem:[#allocation9 + $0xff0] sm:$0xff] }
 0x2d5   : > { %v454_v44 = vrot.slane %v3303_v15, %v453_v34 }
 0x2d6   : > { %2335 = vmatpush1.bf16.msra.mxu0 %v2334_v51  ;;  %2591 = vmatpush1.bf16.msra.mxu1 %v2590_v52  ;;  %v1263_v51 = vld [vmem:[#allocation9 + $0xf28] sm:$0xff]  ;;  %v1261_v52 = vld [vmem:[#allocation9 + $0xf18] sm:$0xff] }
 0x2d7   : > { %2337 = vmatprep.subr.bf16.mxu0 %v2336_v56  ;;  %2593 = vmatprep.subr.bf16.mxu1 %v2592_v57  ;;  %v2610_v56 = vpack.c.bf16 %v1256_v49, %v1252_v37  ;;  %v1258_v57 = vld [vmem:[#allocation9 + $0xf00] sm:$0xff]  ;;  %v2356_v59 = vpack.c.bf16 %v1263_v51, %v1259_v50  ;;  %v2612_v60 = vpack.c.bf16 %v1265_v54, %v1261_v52 }
 0x2d8   : > { %v2358_v6 = vpack.c.bf16 %v1262_v58, %v1258_v57  ;;  %v774_v45 = vadd.f32 %v3289_v47, %v454_v44 }
 0x2da   : > { %2339 = vmatpush1.bf16.msra.mxu0 %v2338_v63  ;;  %2595 = vmatpush1.bf16.msra.mxu1 %v2594_v0  ;;  %v1271_v63 = vld [vmem:[#allocation9 + $0xf68] sm:$0xff]  ;;  %v1269_v0 = vld [vmem:[#allocation9 + $0xf58] sm:$0xff] }
 0x2db   : > { %2341 = vmatprep.subr.bf16.mxu0 %v2340_v7  ;;  %2597 = vmatprep.subr.bf16.mxu1 %v2596_v8  ;;  %v2614_v7 = vpack.c.bf16 %v1264_v61, %v1260_v53  ;;  %v1266_v8 = vld [vmem:[#allocation9 + $0xf40] sm:$0xff]  ;;  %v2360_v10 = vpack.c.bf16 %v1271_v63, %v1267_v62  ;;  %v2616_v11 = vpack.c.bf16 %v1273_v1, %v1269_v0 }
 0x2dc   : > { %v2362_v18 = vpack.c.bf16 %v1270_v9, %v1266_v8 }
 0x2de   : > { %2343 = vmatpush1.bf16.msra.mxu0 %v2342_v17  ;;  %2599 = vmatpush1.bf16.msra.mxu1 %v2598_v14  ;;  %v1279_v17 = vld [vmem:[#allocation9 + $0xfa8] sm:$0xff]  ;;  %v1277_v14 = vld [vmem:[#allocation9 + $0xf98] sm:$0xff] }
 0x2df   : > { %2345 = vmatprep.subr.bf16.mxu0 %v2344_v20  ;;  %2601 = vmatprep.subr.bf16.mxu1 %v2600_v21  ;;  %v2618_v20 = vpack.c.bf16 %v1272_v13, %v1268_v12  ;;  %v1274_v21 = vld [vmem:[#allocation9 + $0xf80] sm:$0xff]  ;;  %v2364_v23 = vpack.c.bf16 %v1279_v17, %v1275_v3  ;;  %v2620_v24 = vpack.c.bf16 %v1281_v16, %v1277_v14 }
 0x2e0   : > { %v2366_v31 = vpack.c.bf16 %v1278_v22, %v1274_v21 }
 0x2e2   : > { %2347 = vmatpush1.bf16.msra.mxu0 %v2346_v27  ;;  %2603 = vmatpush1.bf16.msra.mxu1 %v2602_v28  ;;  %v1287_v27 = vld [vmem:[#allocation9 + $0xfe8] sm:$0xff]  ;;  %v1285_v28 = vld [vmem:[#allocation9 + $0xfd8] sm:$0xff] }
 0x2e3   : > { %2349 = vmatprep.subr.bf16.mxu0 %v2348_v32  ;;  %2605 = vmatprep.subr.bf16.mxu1 %v2604_v33  ;;  %v2622_v32 = vpack.c.bf16 %v1280_v26, %v1276_v25  ;;  %v1282_v33 = vld [vmem:[#allocation9 + $0xfc0] sm:$0xff]  ;;  %v2368_v35 = vpack.c.bf16 %v1287_v27, %v1283_v38  ;;  %v2624_v36 = vpack.c.bf16 %v1289_v30, %v1285_v28 }
 0x2e6   : > { %2351 = vmatpush1.bf16.msra.mxu0 %v2350_v42  ;;  %2607 = vmatpush1.bf16.msra.mxu1 %v2606_v43  ;;  %v2370_v42 = vpack.c.bf16 %v1286_v39, %v1282_v33  ;;  %v2626_v43 = vpack.c.bf16 %v1288_v41, %v1284_v40 }
 0x2e7   : > { %2353 = vmatprep.subr.bf16.mxu0 %v2352_v46  ;;  %2609 = vmatprep.subr.bf16.mxu1 %v2608_v48  ;;  %v1290_v46 = vld [vmem:[#allocation11] sm:$0xf] }
 0x2e8   : > { %v1295_v48 = vrot.slane %v1290_v46, %v429_v4  ;;  %v1303_v37 = vrot.slane %v1290_v46, %v437_v29  ;;  %v1299_v49 = vrot.slane %v1290_v46, %v433_v2  ;;  %v1307_v15 = vrot.slane %v1290_v46, %v441_v5 }
 0x2ea   : > { %2355 = vmatpush1.bf16.msra.mxu0 %v2354_v55  ;;  %2611 = vmatpush1.bf16.msra.mxu1 %v2610_v56 }
 0x2eb   : > { %2357 = vmatprep.subr.bf16.mxu0 %v2356_v59  ;;  %2613 = vmatprep.subr.bf16.mxu1 %v2612_v60 }
 0x2ee   : > { %2359 = vmatpush1.bf16.msra.mxu0 %v2358_v6  ;;  %2615 = vmatpush1.bf16.msra.mxu1 %v2614_v7 }
 0x2ef   : > { %2361 = vmatprep.subr.bf16.mxu0 %v2360_v10  ;;  %2617 = vmatprep.subr.bf16.mxu1 %v2616_v11 }
 0x2f2   : > { %2363 = vmatpush1.bf16.msra.mxu0 %v2362_v18  ;;  %2619 = vmatpush1.bf16.msra.mxu1 %v2618_v20 }
 0x2f3   : > { %2365 = vmatprep.subr.bf16.mxu0 %v2364_v23  ;;  %2621 = vmatprep.subr.bf16.mxu1 %v2620_v24 }
 0x2f6   : > { %2367 = vmatpush1.bf16.msra.mxu0 %v2366_v31  ;;  %2623 = vmatpush1.bf16.msra.mxu1 %v2622_v32 }
 0x2f7   : > { %2369 = vmatprep.subr.bf16.mxu0 %v2368_v35  ;;  %2625 = vmatprep.subr.bf16.mxu1 %v2624_v36  ;;  %v2999_v36 = vmov 1983009808  }
 0x2f8   : > { %v1939_v39 = vunpack.c.l.s4 %v2999_v36 }
 0x2fa   : > { %2371 = vmatpush1.bf16.msra.mxu0 %v2370_v42  ;;  %2627 = vmatpush1.bf16.msra.mxu1 %v2626_v43  ;;  %v1940_v40 = vunpack.c.0.s8 %v1939_v39 }
 0x2fc   : > { %v1943_v42 = vsub.s32 %v1940_v40, %v3252_v19 }
 0x2fd   : > { %1590 = vmatmul.mubr.f32.vlgmr.msra.gmra.mrb[4].mxu0 %v774_v45  ;;  %1874 = vmatmul.mubr.f32.vlgmr.msra.gmra.mrb[4].mxu1 %v774_v45 }
 0x3d0   : > { %v1591_v50 = vpop.f32.mrb[4].mxu0  ;;  %v1875_v51 = vpop.f32.mrb[4].mxu1 }
 0x3d1   : > { %v2628_v52 = vadd.f32 %v1591_v50, %v1295_v48  ;;  %v1593_v54 = vpop.f32.mrb[5].mxu0  ;;  %v1877_v47 = vpop.f32.mrb[5].mxu1  ;;  %v2630_v55 = vadd.f32 %v1875_v51, %v1303_v37 }
 0x3d2   : > { %v2629_v56 = vadd.f32 %v1593_v54, %v1299_v49  ;;  %v2631_v57 = vadd.f32 %v1877_v47, %v1307_v15 }
 0x3d3   : > { %v1880_v58 = vmul.f32 %v2628_v52, %v2628_v52  ;;  %v1896_v4 = vmul.f32 %v2630_v55, %v2630_v55 }
 0x3d4   : > { %v1881_v59 = vmul.f32 %v2629_v56, %v2629_v56  ;;  %v1897_v60 = vmul.f32 %v2631_v57, %v2631_v57 }
 0x3d6   : > { %v1882_v53 = vadd.f32 %v1881_v59, %v1880_v58  ;;  %v1898_v29 = vadd.f32 %v1897_v60, %v1896_v4 }
 0x3d8   : > { %1883 = vadd.xlane.f32.xlu0 %v1882_v53 }
 0x3dc   : > { %1899 = vadd.xlane.f32.xlu0 %v1898_v29 }
 0x465   : > { %v1884_v2 = vpop.xlane.xlu0 %1883 }
 0x466   : > { %2752 = vrsqrt.f32 %v1884_v2  ;;  %vm1887_vm10 = vcmp.eq.f32.partialorder %v1884_v2, inf  ;;  %v1890_v63 = vand.u32 2147483648, %v1884_v2  ;;  %vm1889_vm11 = vcmp.eq.f32.partialorder %v1884_v2, 0.0 }
 0x469   : > { %v1900_v61 = vpop.xlane.xlu0 %1899 }
 0x46a   : > { %2754 = vrsqrt.f32 %v1900_v61  ;;  %vm1903_vm12 = vcmp.eq.f32.partialorder %v1900_v61, inf  ;;  %v1906_v9 = vand.u32 2147483648, %v1900_v61  ;;  %vm1905_vm13 = vcmp.eq.f32.partialorder %v1900_v61, 0.0 }
 0x470   : > { %v2753_v5 = vpop.eup %2752 }
 0x471   : > { %v1886_v62 = vmul.f32 %v2753_v5, %v1884_v2 }
 0x473   : > { %v1888_v0 = vsel %vm1887_vm10, %v1884_v2, %v1886_v62 }
 0x474   : > { %v2755_v1 = vpop.eup %2754  ;;  %v1891_v6 = vsel %vm1889_vm11, %v1890_v63, %v1888_v0 }
 0x475   : > { %v1892_v7 = vmax.f32 %v1891_v6, 1e-12  ;;  %v1902_v8 = vmul.f32 %v2755_v1, %v1900_v61 }
 0x477   : > { %2756 = vrcp.f32 %v1892_v7  ;;  %v1904_v10 = vsel %vm1903_vm12, %v1900_v61, %v1902_v8 }
 0x478   : > { %v1907_v11 = vsel %vm1905_vm13, %v1906_v9, %v1904_v10 }
 0x479   : > { %v1908_v12 = vmax.f32 %v1907_v11, 1e-12 }
 0x47b   : > { %2758 = vrcp.f32 %v1908_v12 }
 0x481   : > { %v2757_v13 = vpop.eup %2756 }
 0x482   : > { %v1894_v3 = vmul.f32 %v2757_v13, %v2628_v52  ;;  %v1895_v17 = vmul.f32 %v2757_v13, %v2629_v56 }
 0x484   : > { %v1912_v20 = vmul.f32 0.5, %v1894_v3  ;;  %v1913_v21 = vmul.f32 0.5, %v1895_v17 }
 0x485   : > { %v2759_v14 = vpop.eup %2758 }
 0x486   : > { %v1910_v16 = vmul.f32 %v2759_v14, %v2630_v55  ;;  %v1911_v18 = vmul.f32 %v2759_v14, %v2631_v57 }
 0x488   : > { %v1914_v22 = vmul.f32 0.5, %v1910_v16  ;;  %v1915_v23 = vmul.f32 0.5, %v1911_v18 }
 0x48a   : > { %v1916_v24 = vadd.f32 %v1914_v22, %v1912_v20  ;;  %v1917_v25 = vadd.f32 %v1915_v23, %v1913_v21 }
 0x48c   : > { %v1918_v26 = vmul.f32 %v1916_v24, %v1916_v24  ;;  %v1919_v38 = vmul.f32 %v1917_v25, %v1917_v25 }
 0x48e   : > { %v1920_v27 = vadd.f32 %v1919_v38, %v1918_v26 }
 0x490   : > { %1921 = vadd.xlane.f32.xlu1 %v1920_v27 }
 0x51d   : > { %v1922_v28 = vpop.xlane.xlu1 %1921 }
 0x51e   : > { %2760 = vrsqrt.f32 %v1922_v28  ;;  %vm1925_vm14 = vcmp.eq.f32.partialorder %v1922_v28, inf  ;;  %v1928_v32 = vand.u32 2147483648, %v1922_v28  ;;  %vm1927_vm15 = vcmp.eq.f32.partialorder %v1922_v28, 0.0 }
 0x528   : > { %v2761_v30 = vpop.eup %2760 }
 0x529   : > { %v1924_v31 = vmul.f32 %v2761_v30, %v1922_v28 }
 0x52b   : > { %v1926_v33 = vsel %vm1925_vm14, %v1922_v28, %v1924_v31 }
 0x52c   : > { %v1929_v34 = vsel %vm1927_vm15, %v1928_v32, %v1926_v33 }
 0x52d   : > { %v1930_v35 = vmax.f32 %v1929_v34, 1e-12 }
 0x52f   : > { %2762 = vrcp.f32 %v1930_v35 }
 0x539   : > { %v2763_v41 = vpop.eup %2762 }
 0x53a   : > { %v1932_v43 = vmul.f32 %v2763_v41, %v1916_v24  ;;  %v1933_v44 = vmul.f32 %v2763_v41, %v1917_v25 }
 0x53c   : > { %v1936_v45 = vcombine.low %v1932_v43, %v1933_v44  ;;  %v1937_v46 = vcombine.high %v1932_v43, %v1933_v44 }
 0x53e   : > { %v1944_v48 = vrot.slane %v1936_v45, %v1943_v42  ;;  %v1951_v37 = vrot.slane %v1937_v46, %v1943_v42  ;;  %2110 = vst.sshfl [vmem:[#allocation12] sm:$0x33 pattern:$0x76325410] %v1936_v45 }
 0x53f   : > { %2111 = vst.sshfl [vmem:[#allocation12 + $0x8] sm:$0x33 pattern:$0x76325410] %v1937_v46 }
 0x540   : > { %v1952_v49 = vcombine.high %v1944_v48, %v1944_v48  ;;  %v1953_v15 = vcombine.high %v1951_v37, %v1951_v37 }
 0x542   : > { %1959 = vst [vmem:[#allocation12 + $0x4] sm:$0xf] %v1952_v49  ;;  %1961 = vst [vmem:[#allocation12 + $0xc] sm:$0xf] %v1953_v15 }
 0x543 PF: > { %p2112_p2 = scmp.ne.s32.totalorder %s3062_s24, 1 }
 0x545   : > { %1964 = sbr.rel (%p2112_p2) target bundleno = 1381 (0x565), region = 72 }
 0x54c   : > { %1971 = vsyncadd [#allocation5], 192  ;;  %s3000_s21 = smov [#allocation12]  }
 0x54d   : > { %s1977_s29 = sshll.u32 %s3000_s21, 4  ;;  %s1978_s29 = int_to_ptr.vmem [resolvable:$true] %s1977_s29 }
 0x54e   : > { %s2901_s6 = scalar_lea.vmem %s1978_s29, 64  ;;  %s2905_s8 = scalar_lea.vmem %s1978_s29, 256 }
 0x54f   : > { %p2902_p4 = scmp.ne.s32.totalorder %s1978_s29, %s2901_s6  ;;  %p2906_p6 = scmp.lt.s32.totalorder %s1978_s29, %s1978_s29 }
 0x550   : > { %p2907_p7 = scmp.lt.s32.totalorder %s2905_s8, %s2901_s6 }
 0x552   : > { %p2908_p9 = por %p2907_p7, %p2906_p6 }
 0x554   : > { %p2909_p11 = pnand %p2908_p9, %p2902_p4 }
 0x556   : > { %2912 = shalt.err (!%p2909_p11)
}
 0x557   : > { %s3381_s30 = sld [smem:[#allocation20_spill]] }
 0x55d   : > { %s2913_s28 = scalar_lea.hbm %s3381_s30, 64 }
 0x55e   : > { %p2914_p13 = scmp.ne.s32.totalorder %s3381_s30, %s2913_s28  ;;  %p2917_p1 = scmp.lt.u32.totalorder %s2913_s28, %s3381_s30 }
 0x560   : > { %p2919_p12 = pnand %p2917_p1, %p2914_p13 }
 0x562   : > { %2922 = shalt.err (!%p2919_p12)
}
 0x563   : > { %s3001_s15 = smov 64   ;;  %s3002_s14 = smov 4  }
 0x564   : > { %1983 = dma.vmem_to_hbm [thread:$0]  %s1978_s29, 64, %s3381_s30, [#allocation5], %s3001_s15, %s3001_s15, %s3002_s14  }
 0x565 PF: > { %p2684_p0 = scmp.eq.s32.totalorder %s3062_s24, 1 }
 0x567   : > { %2960 = dma.done.wait (%p2684_p0), [#allocation5], 256  }
 0x568   : > { %2962 = vsyncadd (%p2684_p0), [#allocation5], 4294967040 }
 0x569 PF: > { %s21_s23 = sadd.s32 1, %s2985_s23   ;;  %s3382_s26 = sld [smem:[#allocation18_spill]] }
 0x56a   : > { %p18_p5 = scmp.ge.s32.totalorder %s21_s23, 4   ;;  %s3383_s10 = sld [smem:[#allocation17_spill]] }
 0x56b   : > { %s3384_s18 = smov %s2969_s19  ;;  %s3385_s19 = smov %s2973_s20 }
 0x56c   : > { %s3387_s21 = smov %s2981_s22  ;;  %20 = sbr.rel (!%p18_p5) target bundleno = 10 (0xa), region = 102 }
 0x56f   : > { %s3386_s20 = smov %s3382_s26 }
 0x570   : > { %s3388_s22 = smov %s3383_s10 }
 0x573   :  { %1993 = vsyncpa [#allocation4], 1 }
 0x574   :  { %1995 = vsyncpa [#allocation4 + $0x1], 1 }
 0x575   :  { %1996 = vsyncpa [#allocation7], 1 }
 0x576   :  { %1997 = vsyncpa [#allocation10], 1 }
 0x577   :  { %1998 = vsyncpa [#allocation5], 1 }
 0x578   :  { %2000 = vsyncpa [#allocation5 + $0x1], 1 }

</bundles_post_ra>
